<compile_context>
chip_gen: v7x
topology: tpu7x:2x2x1
jax: 0.10.0
libtpu: 0.0.40
codegen_flags: <defaults>
</compile_context>

<pallas_src>
import functools

import jax
import jax.numpy as jnp
from jax import lax
from jax.experimental import pallas as pl
from jax.experimental.pallas import tpu as pltpu


def _round_up(x, m):
    return (x + m - 1) // m * m


def _nonlocal_kernel(scal_ref, x_ref, wt_ref, wpg_ref, wo_ref,
                     out_ref, phig_ref, *, hw4, tq, c8p):
    # scal_ref : SMEM f32[2]            -> [gamma, balance]
    # x_ref    : (1, HW, C)  f32        -> resident per batch, quad-ordered rows
    # wt_ref   : (C, C8P)    bf16
    # wpg_ref  : (C, C8P+C2P) bf16      -> fused [w_phi | w_g], zero-padded
    # wo_ref   : (C2P, C)    bf16
    # out_ref  : (1, TQ, C)  f32        -> streamed query tile
    # phig_ref : (HW4, C8P+C2P) bf16    -> persistent pooled phi|g scratch
    q = pl.program_id(1)

    # ---- once per batch element: fused phi/g projection + 2x2 max-pool ----
    # Rows are quad-ordered: quad qd occupies rows [qd*HW4, (qd+1)*HW4), so
    # maxpool2x2(conv1x1(x)) == elementwise max over the 4 quad slabs of x@w.
    @pl.when(q == 0)
    def _():
        pooled = None
        for qd in range(4):
            blk = x_ref[0, pl.ds(qd * hw4, hw4), :].astype(jnp.bfloat16)
            proj = jnp.dot(blk, wpg_ref[...],
                           preferred_element_type=jnp.float32)      # (HW4, C8P+C2P)
            pooled = proj if pooled is None else jnp.maximum(pooled, proj)
        phig_ref[...] = pooled.astype(jnp.bfloat16)

    # ---- per query tile ----
    row0 = pl.multiple_of(q * tq, tq)
    xt = x_ref[0, pl.ds(row0, tq), :]                                # (TQ, C) f32
    xt16 = xt.astype(jnp.bfloat16)

    theta = jnp.dot(xt16, wt_ref[...],
                    preferred_element_type=jnp.float32)              # (TQ, C8P)
    phi = phig_ref[:, :c8p]                                          # (HW4, C8P) bf16
    g = phig_ref[:, c8p:]                                            # (HW4, C2P) bf16

    scores = lax.dot_general(theta.astype(jnp.bfloat16), phi,
                             (((1,), (1,)), ((), ())),
                             preferred_element_type=jnp.float32)     # (TQ, HW4)
    m = jnp.max(scores, axis=-1, keepdims=True)
    e = jnp.exp(scores - m)                                          # f32 softmax math
    rowsum = jnp.sum(e, axis=-1, keepdims=True)

    attn = jnp.dot(e.astype(jnp.bfloat16), g,
                   preferred_element_type=jnp.float32)               # (TQ, C2P)
    attn = attn * pl.reciprocal(rowsum, approx=True)                 # deferred softmax norm

    o = jnp.dot(attn.astype(jnp.bfloat16), wo_ref[...],
                preferred_element_type=jnp.float32)                  # (TQ, C)

    gamma = scal_ref[0]
    bal = scal_ref[1]
    out_ref[0] = (bal * gamma) * o + (1.0 - bal) * xt


def nonlocal_attention(x_nchw, params, tq=None):
    """Forward pass of NonLocalAttention. x_nchw: (B, C, H, W) float32."""
    B, C, H, W = x_nchw.shape
    assert C % 8 == 0 and H % 2 == 0 and W % 2 == 0
    HW = H * W
    HW4 = HW // 4
    C8, C2 = C // 8, C // 2
    C8P = _round_up(C8, 128)       # lane-pad the projection widths (exact: zeros)
    C2P = _round_up(C2, 128)
    CPG = C8P + C2P

    if tq is None:
        tq = next(t for t in (512, 256, 128, 64, 32, 16, 8, 4, 2, 1) if HW % t == 0)
    assert HW % tq == 0

    # Quad-ordered, channels-last view: row j = q*HW4 + (h2*(W//2)+w2) for the
    # pixel (2*h2 + dh, 2*w2 + dw), q = 2*dh + dw.  Shipped ONCE.
    x_nhwc = jnp.transpose(x_nchw, (0, 2, 3, 1)).astype(jnp.float32)
    xq = x_nhwc.reshape(B, H // 2, 2, W // 2, 2, C)
    xq = jnp.transpose(xq, (0, 2, 4, 1, 3, 5)).reshape(B, HW, C)

    f32, bf16 = jnp.float32, jnp.bfloat16
    # 1x1-conv weights are (out, in); transpose to (in, out) and zero-pad the
    # narrow output dims up to lane multiples.  Padding columns/rows are zero,
    # so every contraction stays numerically exact.
    wt = jnp.zeros((C, C8P), f32).at[:, :C8].set(jnp.transpose(params['w_theta'])).astype(bf16)
    wp = jnp.zeros((C, C8P), f32).at[:, :C8].set(jnp.transpose(params['w_phi']))
    wg = jnp.zeros((C, C2P), f32).at[:, :C2].set(jnp.transpose(params['w_g']))
    wpg = jnp.concatenate([wp, wg], axis=1).astype(bf16)                 # (C, C8P+C2P)
    wo = jnp.zeros((C2P, C), f32).at[:C2, :].set(jnp.transpose(params['w_o'])).astype(bf16)
    scal = jnp.asarray([params['gamma'], params['balance']], f32)

    kernel = functools.partial(_nonlocal_kernel, hw4=HW4, tq=tq, c8p=C8P)

    out_q = pl.pallas_call(
        kernel,
        out_shape=jax.ShapeDtypeStruct((B, HW, C), jnp.float32),
        grid=(B, HW // tq),
        in_specs=[
            pl.BlockSpec(memory_space=pltpu.MemorySpace.SMEM),           # [gamma, balance]
            pl.BlockSpec((1, HW, C), lambda b, q: (b, 0, 0)),            # x, resident per batch
            pl.BlockSpec((C, C8P), lambda b, q: (0, 0)),                 # w_theta (resident)
            pl.BlockSpec((C, CPG), lambda b, q: (0, 0)),                 # fused w_phi|w_g
            pl.BlockSpec((C2P, C), lambda b, q: (0, 0)),                 # w_o
        ],
        out_specs=pl.BlockSpec((1, tq, C), lambda b, q: (b, q, 0)),      # streamed q tiles
        scratch_shapes=[pltpu.VMEM((HW4, CPG), jnp.bfloat16)],           # pooled phi|g
        compiler_params=pltpu.CompilerParams(
            dimension_semantics=("parallel", "arbitrary"),
            vmem_limit_bytes=64 * 1024 * 1024),
    )(scal, xq, wt, wpg, wo)

    # undo the quad permutation -> NHWC -> NCHW
    out = out_q.reshape(B, 2, 2, H // 2, W // 2, C)
    out = jnp.transpose(out, (0, 3, 1, 4, 2, 5)).reshape(B, H, W, C)
    return jnp.transpose(out, (0, 3, 1, 2))


def reference(x, params):
    """Pure-JAX f32 replica of the PyTorch forward (NCHW), for verification."""
    B, C, H, W = x.shape

    def conv1x1(t, w):            # w: (out, in)
        return jnp.einsum('oc,bchw->bohw', w, t)

    def maxpool2(t):
        Bc, Cc, Hc, Wc = t.shape
        return jnp.max(t.reshape(Bc, Cc, Hc // 2, 2, Wc // 2, 2), axis=(3, 5))

    theta = conv1x1(x, params['w_theta']).reshape(B, C // 8, H * W)
    phi = maxpool2(conv1x1(x, params['w_phi'])).reshape(B, C // 8, H * W // 4)
    g = maxpool2(conv1x1(x, params['w_g'])).reshape(B, C // 2, H * W // 4)

    scores = jnp.einsum('bci,bcj->bij', theta, phi)           # (B, HW, HW/4)
    beta = jax.nn.softmax(scores, axis=-1)
    o_flat = jnp.einsum('bcj,bij->bci', g, beta)              # (B, C/2, HW)
    o = conv1x1(o_flat.reshape(B, C // 2, H, W), params['w_o'])

    return params['balance'] * (params['gamma'] * o) + (1.0 - params['balance']) * x


if __name__ == "__main__":
    key = jax.random.PRNGKey(0)
    B, C, H, W = 2, 16, 16, 16          # channels must be a multiple of 8
    k1, k2, k3, k4, k5 = jax.random.split(key, 5)
    params = {
        'w_theta': 0.1 * jax.random.normal(k1, (C // 8, C), jnp.float32),
        'w_phi':   0.1 * jax.random.normal(k2, (C // 8, C), jnp.float32),
        'w_g':     0.1 * jax.random.normal(k3, (C // 2, C), jnp.float32),
        'w_o':     0.1 * jax.random.normal(k4, (C, C // 2), jnp.float32),
        # module inits these to 0.0; use non-trivial values so the attention
        # path is actually exercised by the check.
        'gamma':   0.7,
        'balance': 0.3,
    }
    x = jax.random.normal(k5, (B, C, H, W), jnp.float32)

    # tq=128 forces multiple query tiles (HW=256), exercising the pl.when path.
    out = nonlocal_attention(x, params, tq=128)
    jax.block_until_ready(out)

    ref_out = reference(x, params)
    # bf16 MXU operands -> relaxed tolerance vs the f32 reference.
    assert jnp.allclose(out, ref_out, atol=2e-2, rtol=2e-2), "output mismatch"
    print("KERNEL_OK")
</pallas_src>

<mosaic_0001>
module attributes {stable_mosaic.version = 11 : i64} {
  func.func @_nonlocal_kernel(%arg0: i32, %arg1: i32, %arg2: memref<2xf32, #tpu.memory_space<smem>>, %arg3: memref<1x256x16xf32, #tpu.memory_space<vmem>>, %arg4: memref<16x128xbf16, #tpu.memory_space<vmem>>, %arg5: memref<16x256xbf16, #tpu.memory_space<vmem>>, %arg6: memref<128x16xbf16, #tpu.memory_space<vmem>>, %arg7: memref<1x128x16xf32, #tpu.memory_space<vmem>>, %arg8: memref<64x256xbf16, #tpu.memory_space<vmem>>) attributes {dimension_semantics = [#tpu.dimension_semantics<parallel>, #tpu.dimension_semantics<arbitrary>], iteration_bounds = array<i64: 2, 2>, scalar_prefetch = 0 : i64, scratch_operands = 1 : i64, tpu.core_type = #tpu.core_type<tc>, window_params = [{transform_indices = @transform_0, window_bounds = array<i64: 2>}, {transform_indices = @transform_1, window_bounds = array<i64: 1, 256, 16>}, {pipeline_mode = #tpu.pipeline_mode<synchronous>, transform_indices = @transform_2, window_bounds = array<i64: 16, 128>}, {pipeline_mode = #tpu.pipeline_mode<synchronous>, transform_indices = @transform_3, window_bounds = array<i64: 16, 256>}, {pipeline_mode = #tpu.pipeline_mode<synchronous>, transform_indices = @transform_4, window_bounds = array<i64: 128, 16>}, {transform_indices = @transform_5, window_bounds = array<i64: 1, 128, 16>}]} {
    %c0_i32 = arith.constant 0 : i32
    %0 = arith.cmpi eq, %arg1, %c0_i32 : i32
    %1 = arith.extui %0 : i1 to i32
    %c0_i32_0 = arith.constant 0 : i32
    %2 = arith.cmpi ne, %1, %c0_i32_0 : i32
    scf.if %2 {
      %c0_19 = arith.constant 0 : index
      %c0_20 = arith.constant 0 : index
      %c0_21 = arith.constant 0 : index
      %42 = vector.load %arg3[%c0_19, %c0_20, %c0_21] : memref<1x256x16xf32, #tpu.memory_space<vmem>>, vector<1x64x16xf32>
      %43 = vector.shape_cast %42 : vector<1x64x16xf32> to vector<64x16xf32>
      %44 = arith.truncf %43 : vector<64x16xf32> to vector<64x16xbf16>
      %c0_22 = arith.constant 0 : index
      %c0_23 = arith.constant 0 : index
      %45 = vector.load %arg5[%c0_22, %c0_23] : memref<16x256xbf16, #tpu.memory_space<vmem>>, vector<16x256xbf16>
      %cst_24 = arith.constant dense<0.000000e+00> : vector<64x256xf32>
      %46 = tpu.matmul %44, %45, %cst_24 {dimension_numbers = #tpu.dot_dimension_numbers<[1], [0], [0], [1], [0, 0, 1, 1], [], []>} : vector<64x16xbf16>, vector<16x256xbf16>, vector<64x256xf32> -> vector<64x256xf32>
      %c0_25 = arith.constant 0 : index
      %c64 = arith.constant 64 : index
      %c0_26 = arith.constant 0 : index
      %47 = vector.load %arg3[%c0_25, %c64, %c0_26] : memref<1x256x16xf32, #tpu.memory_space<vmem>>, vector<1x64x16xf32>
      %48 = vector.shape_cast %47 : vector<1x64x16xf32> to vector<64x16xf32>
      %49 = arith.truncf %48 : vector<64x16xf32> to vector<64x16xbf16>
      %c0_27 = arith.constant 0 : index
      %c0_28 = arith.constant 0 : index
      %50 = vector.load %arg5[%c0_27, %c0_28] : memref<16x256xbf16, #tpu.memory_space<vmem>>, vector<16x256xbf16>
      %cst_29 = arith.constant dense<0.000000e+00> : vector<64x256xf32>
      %51 = tpu.matmul %49, %50, %cst_29 {dimension_numbers = #tpu.dot_dimension_numbers<[1], [0], [0], [1], [0, 0, 1, 1], [], []>} : vector<64x16xbf16>, vector<16x256xbf16>, vector<64x256xf32> -> vector<64x256xf32>
      %52 = arith.maximumf %46, %51 : vector<64x256xf32>
      %c0_30 = arith.constant 0 : index
      %c128_31 = arith.constant 128 : index
      %c0_32 = arith.constant 0 : index
      %53 = vector.load %arg3[%c0_30, %c128_31, %c0_32] : memref<1x256x16xf32, #tpu.memory_space<vmem>>, vector<1x64x16xf32>
      %54 = vector.shape_cast %53 : vector<1x64x16xf32> to vector<64x16xf32>
      %55 = arith.truncf %54 : vector<64x16xf32> to vector<64x16xbf16>
      %c0_33 = arith.constant 0 : index
      %c0_34 = arith.constant 0 : index
      %56 = vector.load %arg5[%c0_33, %c0_34] : memref<16x256xbf16, #tpu.memory_space<vmem>>, vector<16x256xbf16>
      %cst_35 = arith.constant dense<0.000000e+00> : vector<64x256xf32>
      %57 = tpu.matmul %55, %56, %cst_35 {dimension_numbers = #tpu.dot_dimension_numbers<[1], [0], [0], [1], [0, 0, 1, 1], [], []>} : vector<64x16xbf16>, vector<16x256xbf16>, vector<64x256xf32> -> vector<64x256xf32>
      %58 = arith.maximumf %52, %57 : vector<64x256xf32>
      %c0_36 = arith.constant 0 : index
      %c192 = arith.constant 192 : index
      %c0_37 = arith.constant 0 : index
      %59 = vector.load %arg3[%c0_36, %c192, %c0_37] : memref<1x256x16xf32, #tpu.memory_space<vmem>>, vector<1x64x16xf32>
      %60 = vector.shape_cast %59 : vector<1x64x16xf32> to vector<64x16xf32>
      %61 = arith.truncf %60 : vector<64x16xf32> to vector<64x16xbf16>
      %c0_38 = arith.constant 0 : index
      %c0_39 = arith.constant 0 : index
      %62 = vector.load %arg5[%c0_38, %c0_39] : memref<16x256xbf16, #tpu.memory_space<vmem>>, vector<16x256xbf16>
      %cst_40 = arith.constant dense<0.000000e+00> : vector<64x256xf32>
      %63 = tpu.matmul %61, %62, %cst_40 {dimension_numbers = #tpu.dot_dimension_numbers<[1], [0], [0], [1], [0, 0, 1, 1], [], []>} : vector<64x16xbf16>, vector<16x256xbf16>, vector<64x256xf32> -> vector<64x256xf32>
      %64 = arith.maximumf %58, %63 : vector<64x256xf32>
      %65 = arith.truncf %64 : vector<64x256xf32> to vector<64x256xbf16>
      %c0_41 = arith.constant 0 : index
      %c0_42 = arith.constant 0 : index
      %66 = vector.load %arg8[%c0_41, %c0_42] : memref<64x256xbf16, #tpu.memory_space<vmem>>, vector<64x256xbf16>
      tpu.vector_store %arg8[%c0_41, %c0_42], %65 {strides = array<i32>} : memref<64x256xbf16, #tpu.memory_space<vmem>>, vector<64x256xbf16>,
    } else {
    }
    %c128_i32 = arith.constant 128 : i32
    %3 = arith.muli %arg1, %c128_i32 : i32
    %4 = tpu.assume_multiple %3, 128 : i32
    %c0 = arith.constant 0 : index
    %5 = arith.index_cast %4 : i32 to index
    %c0_1 = arith.constant 0 : index
    %6 = vector.load %arg3[%c0, %5, %c0_1] : memref<1x256x16xf32, #tpu.memory_space<vmem>>, vector<1x128x16xf32>
    %7 = vector.shape_cast %6 : vector<1x128x16xf32> to vector<128x16xf32>
    %8 = arith.truncf %7 : vector<128x16xf32> to vector<128x16xbf16>
    %c0_2 = arith.constant 0 : index
    %c0_3 = arith.constant 0 : index
    %9 = vector.load %arg4[%c0_2, %c0_3] : memref<16x128xbf16, #tpu.memory_space<vmem>>, vector<16x128xbf16>
    %cst = arith.constant dense<0.000000e+00> : vector<128x128xf32>
    %10 = tpu.matmul %8, %9, %cst {dimension_numbers = #tpu.dot_dimension_numbers<[1], [0], [0], [1], [0, 0, 1, 1], [], []>} : vector<128x16xbf16>, vector<16x128xbf16>, vector<128x128xf32> -> vector<128x128xf32>
    %c0_4 = arith.constant 0 : index
    %c0_5 = arith.constant 0 : index
    %11 = vector.load %arg8[%c0_4, %c0_5] : memref<64x256xbf16, #tpu.memory_space<vmem>>, vector<64x128xbf16>
    %c0_6 = arith.constant 0 : index
    %c128 = arith.constant 128 : index
    %12 = vector.load %arg8[%c0_6, %c128] : memref<64x256xbf16, #tpu.memory_space<vmem>>, vector<64x128xbf16>
    %13 = arith.truncf %10 : vector<128x128xf32> to vector<128x128xbf16>
    %cst_7 = arith.constant dense<0.000000e+00> : vector<128x64xf32>
    %14 = tpu.matmul %13, %11, %cst_7 {dimension_numbers = #tpu.dot_dimension_numbers<[1], [1], [0], [0], [0, 0, 1, 0], [], []>} : vector<128x128xbf16>, vector<64x128xbf16>, vector<128x64xf32> -> vector<128x64xf32>
    %cst_8 = arith.constant dense<0xFF800000> : vector<128xf32>
    %15 = vector.multi_reduction <maximumf>, %14, %cst_8 [1] : vector<128x64xf32> to vector<128xf32>
    %16 = vector.shape_cast %15 : vector<128xf32> to vector<128x1xf32>
    %17 = vector.broadcast %16 : vector<128x1xf32> to vector<128x64xf32>
    %18 = arith.subf %14, %17 : vector<128x64xf32>
    %19 = math.exp %18 : vector<128x64xf32>
    %cst_9 = arith.constant dense<0.000000e+00> : vector<128xf32>
    %20 = vector.multi_reduction <add>, %19, %cst_9 [1] : vector<128x64xf32> to vector<128xf32>
    %21 = vector.shape_cast %20 : vector<128xf32> to vector<128x1xf32>
    %22 = arith.truncf %19 : vector<128x64xf32> to vector<128x64xbf16>
    %cst_10 = arith.constant dense<0.000000e+00> : vector<128x128xf32>
    %23 = tpu.matmul %22, %12, %cst_10 {dimension_numbers = #tpu.dot_dimension_numbers<[1], [0], [0], [1], [0, 0, 1, 1], [], []>} : vector<128x64xbf16>, vector<64x128xbf16>, vector<128x128xf32> -> vector<128x128xf32>
    %24 = tpu.reciprocal %21 {approx = true} : vector<128x1xf32> -> vector<128x1xf32>
    %25 = vector.broadcast %24 : vector<128x1xf32> to vector<128x128xf32>
    %26 = arith.mulf %23, %25 : vector<128x128xf32>
    %27 = arith.truncf %26 : vector<128x128xf32> to vector<128x128xbf16>
    %c0_11 = arith.constant 0 : index
    %c0_12 = arith.constant 0 : index
    %28 = vector.load %arg6[%c0_11, %c0_12] : memref<128x16xbf16, #tpu.memory_space<vmem>>, vector<128x16xbf16>
    %cst_13 = arith.constant dense<0.000000e+00> : vector<128x16xf32>
    %29 = tpu.matmul %27, %28, %cst_13 {dimension_numbers = #tpu.dot_dimension_numbers<[1], [0], [0], [1], [0, 0, 1, 1], [], []>} : vector<128x128xbf16>, vector<128x16xbf16>, vector<128x16xf32> -> vector<128x16xf32>
    %c0_14 = arith.constant 0 : index
    %30 = memref.load %arg2[%c0_14] : memref<2xf32, #tpu.memory_space<smem>>
    %c1 = arith.constant 1 : index
    %31 = memref.load %arg2[%c1] : memref<2xf32, #tpu.memory_space<smem>>
    %32 = arith.mulf %31, %30 : f32
    %33 = vector.broadcast %32 : f32 to vector<128x16xf32>
    %34 = arith.mulf %33, %29 : vector<128x16xf32>
    %cst_15 = arith.constant 1.000000e+00 : f32
    %35 = arith.subf %cst_15, %31 : f32
    %36 = vector.broadcast %35 : f32 to vector<128x16xf32>
    %37 = arith.mulf %36, %7 : vector<128x16xf32>
    %38 = arith.addf %34, %37 : vector<128x16xf32>
    %c0_16 = arith.constant 0 : index
    %c0_17 = arith.constant 0 : index
    %c0_18 = arith.constant 0 : index
    %39 = vector.load %arg7[%c0_16, %c0_17, %c0_18] : memref<1x128x16xf32, #tpu.memory_space<vmem>>, vector<1x128x16xf32>
    %40 = vector.shape_cast %39 : vector<1x128x16xf32> to vector<128x16xf32>
    %41 = vector.shape_cast %38 : vector<128x16xf32> to vector<1x128x16xf32>
    tpu.vector_store %arg7[%c0_16, %c0_17, %c0_18], %41 {strides = array<i32>} : memref<1x128x16xf32, #tpu.memory_space<vmem>>, vector<1x128x16xf32>,
    return
  }
  func.func @transform_0(%arg0: i32, %arg1: i32) -> i32 {
    %c0_i32 = arith.constant 0 : i32
    %c0_i32_0 = arith.constant 0 : i32
    return %c0_i32 : i32
  }
  func.func @transform_1(%arg0: i32, %arg1: i32) -> (i32, i32, i32) {
    %c0_i32 = arith.constant 0 : i32
    %c0_i32_0 = arith.constant 0 : i32
    %c0_i32_1 = arith.constant 0 : i32
    return %arg0, %c0_i32, %c0_i32_0 : i32, i32, i32
  }
  func.func @transform_2(%arg0: i32, %arg1: i32) -> (i32, i32) {
    %c0_i32 = arith.constant 0 : i32
    %c0_i32_0 = arith.constant 0 : i32
    %c0_i32_1 = arith.constant 0 : i32
    return %c0_i32, %c0_i32_0 : i32, i32
  }
  func.func @transform_3(%arg0: i32, %arg1: i32) -> (i32, i32) {
    %c0_i32 = arith.constant 0 : i32
    %c0_i32_0 = arith.constant 0 : i32
    %c0_i32_1 = arith.constant 0 : i32
    return %c0_i32, %c0_i32_0 : i32, i32
  }
  func.func @transform_4(%arg0: i32, %arg1: i32) -> (i32, i32) {
    %c0_i32 = arith.constant 0 : i32
    %c0_i32_0 = arith.constant 0 : i32
    %c0_i32_1 = arith.constant 0 : i32
    return %c0_i32, %c0_i32_0 : i32, i32
  }
  func.func @transform_5(%arg0: i32, %arg1: i32) -> (i32, i32, i32) {
    %c0_i32 = arith.constant 0 : i32
    %c0_i32_0 = arith.constant 0 : i32
    return %arg0, %arg1, %c0_i32 : i32, i32, i32
  }
}

</mosaic_0001>

<bundles_post_ra>
// kernel: tpu_custom_call.1
= control target key start
LH: loop header
LB: loop body
LE: loop exit
PB: predicated region body
PF: predicated region fallthrough
CT: control target
= control target key end

     0   :  { %s3246_s0 = inlined_call_operand.hbm [shape: f32[2], index: 0, kind: input, shape index: {}]   ;;  %s3247_s1 = inlined_call_operand.hbm [shape: f32[2,256,16], index: 1, kind: input, shape index: {}]   ;;  %s3248_s2 = inlined_call_operand.hbm [shape: bf16[16,128], index: 2, kind: input, shape index: {}]   ;;  %s3249_s3 = inlined_call_operand.hbm [shape: bf16[16,256], index: 3, kind: input, shape index: {}]   ;;  %s3250_s4 = inlined_call_operand.hbm [shape: bf16[128,16], index: 4, kind: input, shape index: {}]   ;;  %s3251_s5 = inlined_call_operand.hbm [shape: f32[2,256,16], index: 5, kind: output, shape index: {}]  }
   0x1   :  { %3266 = sst [smem:[#allocation23_spill]] %s3246_s0 }
   0x2   :  { %3267 = sst [smem:[#allocation24_spill]] %s3248_s2 }
   0x3   :  { %3268 = sst [smem:[#allocation25_spill]] %s3249_s3 }
   0x4   :  { %3269 = sst [smem:[#allocation26_spill]] %s3251_s5 }
   0x5   :  { %10 = vsyncpa [#allocation6], 0 }
   0x6   :  { %11 = vsyncpa [#allocation4], 0 }
   0x7   :  { %13 = vsyncpa [#allocation4 + $0x1], 0 }
   0x8   :  { %14 = vsyncpa [#allocation9], 0 }
   0x9   :  { %15 = vsyncpa [#allocation12], 0 }
   0xa   :  { %16 = vsyncpa [#allocation5], 0 }
   0xb   :  { %18 = vsyncpa [#allocation5 + $0x1], 0  ;;  %s2510_s18 = smov 0   ;;  %s2512_s19 = smov 0  }
   0xc   :  { %s2514_s20 = smov 0   ;;  %s2516_s21 = smov 0  }
   0xd   :  { %s2518_s22 = smov 0   ;;  %s2520_s23 = smov 0  }
   0xe   :  { %s2522_s24 = smov 0   ;;  %s2524_s25 = smov 0  }
   0xf   :  { %s2526_s26 = smov 0   ;;  %s2528_s27 = smov 0  }
  0x10   :  { %s2530_s28 = smov 0  }
  0x11 LB: > { %3270 = sst [smem:[#allocation19_spill]] %s2425_s18  ;;  %s1744_s29 = sadd.s32 4294967295, %s2465_s28   ;;  %s2465_s28 = sphi %s2530_s28, %s24_s28   ;;  %s2461_s27 = sphi %s2528_s27, %s3310_s27   ;;  %s2457_s26 = sphi %s2526_s26, %s3309_s26   ;;  %s2453_s25 = sphi %s2524_s25, %s3308_s25   ;;  %s2449_s24 = sphi %s2522_s24, %s3307_s24   ;;  %s2445_s23 = sphi %s2520_s23, %s3306_s23   ;;  %s2441_s22 = sphi %s2518_s22, %s3305_s22   ;;  %s2437_s21 = sphi %s2516_s21, %s3304_s21   ;;  %s2433_s20 = sphi %s2514_s20, %s3303_s20   ;;  %s2429_s19 = sphi %s2512_s19, %s3302_s19   ;;  %s2425_s18 = sphi %s2510_s18, %s3301_s18  }
  0x12   : > { %3271 = sst [smem:[#allocation20_spill]] %s2453_s25  ;;  %s1745_s30 = sadd.s32 4294967294, %s2465_s28  }
  0x13   : > { %p77_p0 = scmp.ne.s32.totalorder %s2441_s22, %s2437_s21  ;;  %p2566_p1 = scmp.eq.s32.totalorder %s1744_s29, 0 }
  0x14   : > { %p165_p2 = scmp.ne.s32.totalorder %s2433_s20, %s2429_s19  ;;  %p166_p3 = scmp.eq.s32.totalorder %s1744_s29, 3 }
  0x15   : > { %s3272_s6 = scalar_select %p2566_p1, 1, 0 }
  0x16   : > { %p2574_p4 = por %p2566_p1, %p77_p0  ;;  %p171_p5 = scmp.ne.s32.totalorder %s2429_s19, %s2425_s18 }
  0x17   : > { %p2580_p6 = por %p166_p3, %p165_p2  ;;  %p172_p7 = scmp.eq.s32.totalorder %s1745_s30, 3 }
  0x18   : > { %s3273_s7 = scalar_select %p2574_p4, 1, 0 }
  0x19   : > { %s3274_s8 = scalar_select %p2580_p6, 1, 0 }
  0x1a   : > { %p1746_p8 = scmp.ge.s32.totalorder %s2465_s28, 1  ;;  %p179_p9 = scmp.lt.s32.totalorder %s2465_s28, 5 }
  0x1b   : > { %3275 = sst [smem:[#allocation21_spill]] %s3274_s8  ;;  %p2586_p10 = por %p172_p7, %p171_p5 }
  0x1c   : > { %p2590_p11 = pnand %p1746_p8, %p179_p9  ;;  %s2467_s11 = smov [#allocation8]  }
  0x1d   : > { %s3276_s9 = scalar_select %p2586_p10, 1, 0 }
  0x1e   : > { %s3278_s10 = scalar_select %p2590_p11, 1, 0 }
  0x1f   : > { %3277 = sst [smem:[#allocation22_spill]] %s3276_s9  ;;  %s200_s12 = sshll.u32 %s2467_s11, 4  ;;  %s201_s12 = int_to_ptr.vmem [resolvable:$true] %s200_s12 }
  0x20   : > { %p1998_p12 = pneg %p2590_p11  ;;  %s3280_s2 = sld [smem:[#allocation24_spill]] }
  0x22   : > { %p2598_p13 = pnand %p1998_p12, %p2566_p1 }
  0x24   : > { %p2610_p2 = pneg %p2598_p13 }
  0x26   : > { %s2204_s16 = scalar_lea.hbm %s3280_s2, 128 }
  0x27   : > { %p2205_p0 = scmp.ne.s32.totalorder %s3280_s2, %s2204_s16  ;;  %p2211_p7 = scmp.lt.u32.totalorder %s2204_s16, %s3280_s2 }
  0x29   : > { %p2207_p3 = pnand %p2610_p2, %p2205_p0 }
  0x2b   : > { %p2208_p5 = pneg %p2207_p3 }
  0x2d   : > { %p2213_p8 = pnand %p2211_p7, %p2208_p5 }
  0x2f   : > { %2216 = shalt.err (!%p2213_p8)
}
  0x30   : > { %s2217_s14 = scalar_lea.vmem %s201_s12, 128  ;;  %p2225_p6 = scmp.lt.s32.totalorder %s201_s12, %s201_s12 }
  0x31   : > { %p2218_p9 = scmp.ne.s32.totalorder %s201_s12, %s2217_s14  ;;  %p2226_p4 = scmp.lt.s32.totalorder %s2217_s14, %s2217_s14 }
  0x33   : > { %p2220_p12 = pnand %p2218_p9, %p2610_p2  ;;  %p2227_p1 = por %p2226_p4, %p2225_p6 }
  0x35   : > { %p2221_p10 = pneg %p2220_p12 }
  0x37   : > { %p2228_p11 = pnand %p2227_p1, %p2221_p10 }
  0x39   : > { %2231 = shalt.err (!%p2228_p11)
}
  0x3a   : > { %s3262_s15 = smov 64   ;;  %s3263_s17 = smov 4  }
  0x3b   : > { %2004 = dma.hbm_to_vmem [thread:$0]  (!%p2598_p13), %s3280_s2, 128, %s201_s12, [#allocation9], %s3262_s15, %s3262_s15, %s3263_s17  }
  0x3c   : > { %s3282_s0 = sld [smem:[#allocation23_spill]] }
  0x42   : > { %s2232_s9 = scalar_lea.hbm %s3282_s0, 16 }
  0x43   : > { %p2233_p1 = scmp.ne.s32.totalorder %s3282_s0, %s2232_s9  ;;  %p2239_p10 = scmp.lt.u32.totalorder %s2232_s9, %s3282_s0 }
  0x45   : > { %p2235_p4 = pnand %p2233_p1, %p2610_p2 }
  0x47   : > { %p2236_p6 = pneg %p2235_p4 }
  0x49   : > { %p2241_p11 = pnand %p2239_p10, %p2236_p6 }
  0x4b   : > { %2244 = shalt.err (!%p2241_p11)
}
  0x4c   : > { %s2470_s25 = smov [#allocation3]   ;;  %s2471_s21 = smov [#allocation10]  }
  0x4d   : > { %2001 = dma.hbm_to_smem (!%p2598_p13), %s3282_s0, 16, %s2470_s25, [#allocation6]  }
  0x4e   : > { %s213_s18 = sshll.u32 %s2471_s21, 4  ;;  %s3283_s3 = sld [smem:[#allocation25_spill]]  ;;  %s214_s18 = int_to_ptr.vmem [resolvable:$true] %s213_s18 }
  0x54   : > { %s2245_s14 = scalar_lea.hbm %s3283_s3, 256 }
  0x55   : > { %p2246_p0 = scmp.ne.s32.totalorder %s3283_s3, %s2245_s14  ;;  %p2252_p7 = scmp.lt.u32.totalorder %s2245_s14, %s3283_s3 }
  0x57   : > { %p2248_p3 = pnand %p2246_p0, %p2610_p2 }
  0x59   : > { %p2249_p5 = pneg %p2248_p3 }
  0x5b   : > { %p2254_p8 = pnand %p2252_p7, %p2249_p5 }
  0x5d   : > { %2257 = shalt.err (!%p2254_p8)
}
  0x5e   : > { %s2258_s25 = scalar_lea.vmem %s214_s18, 256  ;;  %p2266_p4 = scmp.lt.s32.totalorder %s214_s18, %s214_s18 }
  0x5f   : > { %p2259_p9 = scmp.ne.s32.totalorder %s214_s18, %s2258_s25  ;;  %p2267_p6 = scmp.lt.s32.totalorder %s2258_s25, %s2258_s25 }
  0x61   : > { %p2261_p12 = pnand %p2259_p9, %p2610_p2  ;;  %p2268_p10 = por %p2267_p6, %p2266_p4 }
  0x63   : > { %p2262_p1 = pneg %p2261_p12 }
  0x65   : > { %p2269_p11 = pnand %p2268_p10, %p2262_p1 }
  0x67   : > { %2272 = shalt.err (!%p2269_p11)
}
  0x68   : > { %s3264_s15 = smov 128   ;;  %s3265_s12 = smov 8  }
  0x69   : > { %2007 = dma.hbm_to_vmem [thread:$0]  (!%p2598_p13), %s3283_s3, 256, %s214_s18, [#allocation9], %s3264_s15, %s3264_s15, %s3265_s12  }
  0x6a   : > { %s2474_s30 = smov [#allocation11]   ;;  %s2273_s8 = scalar_lea.hbm %s3250_s4, 1024 }
  0x6b   : > { %s226_s11 = sshll.u32 %s2474_s30, 4  ;;  %p2274_p0 = scmp.ne.s32.totalorder %s3250_s4, %s2273_s8  ;;  %s227_s11 = int_to_ptr.vmem [resolvable:$true] %s226_s11 }
  0x6c   : > { %p2280_p7 = scmp.lt.u32.totalorder %s2273_s8, %s3250_s4 }
  0x6d   : > { %p2276_p3 = pnand %p2274_p0, %p2610_p2 }
  0x6f   : > { %p2277_p5 = pneg %p2276_p3 }
  0x71   : > { %p2282_p8 = pnand %p2280_p7, %p2277_p5 }
  0x73   : > { %2285 = shalt.err (!%p2282_p8)
}
  0x74   : > { %s2286_s18 = scalar_lea.vmem %s227_s11, 1024  ;;  %p2294_p4 = scmp.lt.s32.totalorder %s227_s11, %s227_s11 }
  0x75   : > { %p2287_p9 = scmp.ne.s32.totalorder %s227_s11, %s2286_s18  ;;  %p2295_p6 = scmp.lt.s32.totalorder %s2286_s18, %s2286_s18 }
  0x77   : > { %p2289_p12 = pnand %p2287_p9, %p2610_p2  ;;  %p2296_p10 = por %p2295_p6, %p2294_p4 }
  0x79   : > { %p2290_p1 = pneg %p2289_p12 }
  0x7b   : > { %p2297_p11 = pnand %p2296_p10, %p2290_p1 }
  0x7d   : > { %2300 = shalt.err (!%p2297_p11)
}
  0x7e   : > { %s3284_s16 = smov 4   ;;  %s3285_s21 = smov 64  }
  0x7f   : > { %2010 = dma.hbm_to_vmem [thread:$0]  (!%p2598_p13), %s3250_s4, 1024, %s227_s11, [#allocation12], %s3285_s21, %s3285_s21, %s3284_s16  }
  0x80   : > { %s33_s13 = sadd.s32 1, %s2457_s26  ;;  %s36_s29 = sadd.s32 1, %s2461_s27 }
  0x81   : > { %p34_p2 = scmp.ge.s32.totalorder %s33_s13, 2  ;;  %s64_s30 = sadd.s32 1, %s2445_s23 }
  0x82   : > { %p71_p0 = scmp.ne.s32.totalorder %s2445_s23, %s2441_s22  ;;  %p72_p3 = scmp.eq.s32.totalorder %s2465_s28, 0 }
  0x83   : > { %s3312_s13 = smov (%p34_p2, %s33_s13), 0  ;;  %s3314_s29 = smov (!%p34_p2, %s36_s29), %s2461_s27 }
  0x84   : > { %s151_s14 = ssub.s32 %s2457_s26, %s3312_s13  ;;  %p38_p5 = scmp.ge.s32.totalorder %s3314_s29, 2 }
  0x85   : > { %s155_s5 = sadd.s32 1, %s2433_s20  ;;  %p2699_p7 = por %p72_p3, %p71_p0 }
  0x86   : > { %p2023_p13 = scmp.lt.s32.totalorder %s2465_s28, 4  ;;  %s3316_s29 = smov (%p38_p5, %s3314_s29), 0 }
  0x87   : > { %s240_s8 = sand.u32 1, %s2445_s23   ;;  %s1814_s9 = sshll.u32 %s2461_s27, 12 }
  0x88   : > { %s61_s25 = ssub.s32 %s2461_s27, %s3316_s29  ;;  %s1752_s16 = sshll.u32 %s240_s8, 8 }
  0x89   : > { %p62_p8 = scmp.eq.s32.totalorder %s61_s25, 0  ;;  %s152_s18 = sor.u32 %s151_s14, %s61_s25 }
  0x8a   : > { %p153_p9 = scmp.eq.s32.totalorder %s152_s18, 0  ;;  %s2719_s12 = scalar_lea.hbm %s3247_s1, %s1814_s9 }
  0x8b   : > { %s2711_s21 = scalar_select %p62_p8, %s2445_s23, %s64_s30  }
  0x8c   : > { %s2714_s0 = scalar_select %p153_p9, %s2433_s20, %s155_s5  }
  0x8d   : > { %s244_s2 = scalar_lea.vmem [#allocation7], %s1752_s16  ;;  %p2725_p12 = pnand %p2023_p13, %p2699_p7 }
  0x8e   : > { %s251_s3 = sshll.u32 %s244_s2, 4  ;;  %s2731_s30 = scalar_lea.sflag [#allocation4], %s240_s8  ;;  %s2729_s3 = int_to_ptr.vmem [resolvable:$true] %s251_s3 }
  0x8f   : > { %s2301_s15 = scalar_lea.hbm %s2719_s12, 4096  ;;  %p2303_p4 = pneg %p2725_p12 }
  0x90   : > { %p2302_p1 = scmp.ne.s32.totalorder %s2719_s12, %s2301_s15  ;;  %s2306_s11 = scalar_lea.hbm %s3247_s1, 8192 }
  0x91   : > { %p2307_p11 = scmp.lt.u32.totalorder %s2719_s12, %s3247_s1  ;;  %p2308_p2 = scmp.lt.u32.totalorder %s2306_s11, %s2301_s15 }
  0x92   : > { %p2304_p6 = pnand %p2303_p4, %p2302_p1  ;;  %p2310_p3 = scmp.lt.u32.totalorder %s2301_s15, %s2719_s12 }
  0x93   : > { %p2309_p0 = por %p2308_p2, %p2307_p11 }
  0x94   : > { %p2305_p10 = pneg %p2304_p6 }
  0x95   : > { %p2311_p5 = por %p2310_p3, %p2309_p0 }
  0x97   : > { %p2312_p7 = pnand %p2311_p5, %p2305_p10 }
  0x99   : > { %2315 = shalt.err (!%p2312_p7)
}
  0x9a   : > { %s2316_s8 = scalar_lea.vmem %s2729_s3, 4096  ;;  %s2475_s18 = smov [#allocation7]  }
  0x9b   : > { %p2317_p13 = scmp.ne.s32.totalorder %s2729_s3, %s2316_s8  ;;  %s2321_s16 = sshll.u32 %s2475_s18, 4  ;;  %s2322_s16 = int_to_ptr.vmem [resolvable:$false] %s2321_s16 }
  0x9c   : > { %s2323_s17 = scalar_lea.vmem %s2322_s16, 8192  ;;  %p2324_p1 = scmp.lt.s32.totalorder %s2729_s3, %s2322_s16 }
  0x9d   : > { %p2319_p8 = pnand %p2317_p13, %p2303_p4  ;;  %p2325_p6 = scmp.lt.s32.totalorder %s2323_s17, %s2316_s8 }
  0x9f   : > { %p2320_p9 = pneg %p2319_p8  ;;  %p2326_p11 = por %p2325_p6, %p2324_p1 }
  0xa1   : > { %p2327_p2 = pnand %p2326_p11, %p2320_p9 }
  0xa3   : > { %2330 = shalt.err (!%p2327_p2)
}
  0xa4   : > { %s3288_s15 = smov 8   ;;  %s3289_s2 = smov 128  }
  0xa5   : > { %2014 = dma.hbm_to_vmem [thread:$0]  (!%p2725_p12), %s2719_s12, 4096, %s2729_s3, %s2731_s30, %s3289_s2, %s3289_s2, %s3288_s15  }
  0xa6   : > { %p3290_p4 = scmp.ne.s32.totalorder %s3278_s10, 0 }
  0xa7   : > { %p3291_p10 = scmp.ne.s32.totalorder (!%p3290_p4), %s3272_s6, 0 }
  0xa8   : > { %263 = sbr.rel (%p3290_p4) target bundleno = 1552 (0x610), region = 40 }
  0xaf   : > { %2404 = dma.done.wait (%p3291_p10), [#allocation6], 16  }
  0xb0   : > { %2406 = vsyncadd (%p3291_p10), [#allocation6], 4294967280  ;;  %s269_s5 = sand.u32 1, %s2441_s22   ;;  %p3292_p0 = scmp.ne.s32.totalorder %s3273_s7, 0 }
  0xb1   : > { %s1757_s14 = sshll.u32 %s269_s5, 8  ;;  %s270_s11 = scalar_lea.sflag [#allocation4], %s269_s5 }
  0xb2   : > { %s2769_s9 = scalar_lea.vmem [#allocation7], %s1757_s14 }
  0xb3   : > { %2408 = dma.done.wait (%p3292_p0), %s270_s11, 4096  }
  0xb4   : > { %2410 = vsyncadd (%p3292_p0), %s270_s11, 4294963200 }
  0xb5   : > { %2412 = dma.done.wait (%p3291_p10), [#allocation9], 384  }
  0xb6   : > { %2414 = vsyncadd (%p3291_p10), [#allocation9], 4294966912 }
  0xb7   : > { %2416 = dma.done.wait (%p3291_p10), [#allocation12], 1024  }
  0xb8   : > { %2418 = vsyncadd (%p3291_p10), [#allocation12], 4294966272 }
  0xb9   : > { %290 = sfence }
  0xba   : > { %s310_s3 = sand.u32 1, %s2429_s19   ;;  %p1762_p12 = scmp.ne.s32.totalorder %s2449_s24, 0 }
  0xbb   : > { %s1761_s10 = sshll.u32 %s310_s3, 7  ;;  %v2128_v0 = vld [vmem:[#allocation10 + $0x4] ss:$8 sps:$4 sm:$0xff] (!%p1762_p12)   ;;  %v2130_v1 = vld [vmem:[#allocation10] ss:$8 sps:$4 sm:$0xff] (!%p1762_p12)   ;;  %v2476_v2 = vmov (!%p1762_p12), 0  }
  0xbc   : > { %s2786_s7 = scalar_lea.vmem [#allocation13], %s1761_s10  ;;  %318 = sbr.rel (%p1762_p12) target bundleno = 471 (0x1d7), region = 64  ;;  %388 = vmatprep.mubr.bf16.mxu0 (!%p1762_p12), %v2476_v2  ;;  %485 = vmatprep.mubr.bf16.mxu1 (!%p1762_p12), %v2476_v2  ;;  %v319_v3 = vld [vmem:[%s2769_s9] sm:$0xff] (!%p1762_p12)  ;;  %v320_v4 = vld [vmem:[%s2769_s9 + $0x8] sm:$0xff] (!%p1762_p12)  ;;  %vm343_vm0 = vcmask (!%p1762_p12), 130048   ;;  %v321_v9 = vld [vmem:[%s2769_s9 + $0x10] sm:$0xff] (!%p1762_p12) }
  0xbd   : > { %356 = vmatprep.subr.bf16.mxu0 (!%p1762_p12), %v2128_v0  ;;  %453 = vmatprep.subr.bf16.mxu1 (!%p1762_p12), %v2128_v0  ;;  %v327_v5 = vpack.c.bf16 (!%p1762_p12), %v320_v4, %v319_v3  ;;  %v429_v6 = vld [vmem:[%s2769_s9 + $0x40] sm:$0xff] (!%p1762_p12)  ;;  %v430_v7 = vld [vmem:[%s2769_s9 + $0x48] sm:$0xff] (!%p1762_p12)  ;;  %v322_v10 = vld [vmem:[%s2769_s9 + $0x18] sm:$0xff] (!%p1762_p12) }
  0xbe   : > { %357 = vmatpush1.bf16.msra.mxu0 (!%p1762_p12), %v2130_v1  ;;  %454 = vmatpush1.bf16.msra.mxu1 (!%p1762_p12), %v2130_v1  ;;  %v437_v8 = vpack.c.bf16 (!%p1762_p12), %v430_v7, %v429_v6  ;;  %v431_v11 = vld [vmem:[%s2769_s9 + $0x50] sm:$0xff] (!%p1762_p12)  ;;  %v432_v12 = vld [vmem:[%s2769_s9 + $0x58] sm:$0xff] (!%p1762_p12)  ;;  %v328_v13 = vpack.c.bf16 (!%p1762_p12), %v322_v10, %v321_v9  ;;  %v323_v15 = vld [vmem:[%s2769_s9 + $0x20] sm:$0xff] (!%p1762_p12) }
  0xbf   : > { %566 = vmatprep.subr.bf16.mxu0 (!%p1762_p12), %v2128_v0  ;;  %679 = vmatprep.subr.bf16.mxu1 (!%p1762_p12), %v2128_v0  ;;  %v438_v14 = vpack.c.bf16 (!%p1762_p12), %v432_v12, %v431_v11  ;;  %v324_v16 = vld [vmem:[%s2769_s9 + $0x28] sm:$0xff] (!%p1762_p12)  ;;  %v433_v17 = vld [vmem:[%s2769_s9 + $0x60] sm:$0xff] (!%p1762_p12)  ;;  %v325_v21 = vld [vmem:[%s2769_s9 + $0x30] sm:$0xff] (!%p1762_p12) }
  0xc0   : > { %v434_v18 = vld [vmem:[%s2769_s9 + $0x68] sm:$0xff] (!%p1762_p12)  ;;  %v329_v19 = vpack.c.bf16 (!%p1762_p12), %v324_v16, %v323_v15  ;;  %v326_v22 = vld [vmem:[%s2769_s9 + $0x38] sm:$0xff] (!%p1762_p12)  ;;  %v435_v23 = vld [vmem:[%s2769_s9 + $0x70] sm:$0xff] (!%p1762_p12) }
  0xc1   : > { %1765 = vmatmul.mubr.msk.bf16.vlgmr.msra.gmra.mrb[0].mxu0 (!%p1762_p12), %vm343_vm0, %v327_v5  ;;  %1769 = vmatmul.mubr.msk.bf16.vlgmr.msra.gmra.mrb[0].mxu1 (!%p1762_p12), %vm343_vm0, %v437_v8  ;;  %v439_v20 = vpack.c.bf16 (!%p1762_p12), %v434_v18, %v433_v17  ;;  %v436_v24 = vld [vmem:[%s2769_s9 + $0x78] sm:$0xff] (!%p1762_p12)  ;;  %v330_v25 = vpack.c.bf16 (!%p1762_p12), %v326_v22, %v325_v21  ;;  %v542_v27 = vld [vmem:[%s2769_s9 + $0x80] sm:$0xff] (!%p1762_p12)  ;;  %v543_v28 = vld [vmem:[%s2769_s9 + $0x88] sm:$0xff] (!%p1762_p12) }
  0xc2   : > { %567 = vmatpush1.bf16.msra.mxu0 (!%p1762_p12), %v2130_v1  ;;  %680 = vmatpush1.bf16.msra.mxu1 (!%p1762_p12), %v2130_v1  ;;  %v440_v26 = vpack.c.bf16 (!%p1762_p12), %v436_v24, %v435_v23  ;;  %v655_v29 = vld [vmem:[%s2769_s9 + $0xc0] sm:$0xff] (!%p1762_p12)  ;;  %v656_v30 = vld [vmem:[%s2769_s9 + $0xc8] sm:$0xff] (!%p1762_p12)  ;;  %v550_v31 = vpack.c.bf16 (!%p1762_p12), %v543_v28, %v542_v27  ;;  %v544_v33 = vld [vmem:[%s2769_s9 + $0x90] sm:$0xff] (!%p1762_p12) }
  0xc3   : > { %398 = vmatprep.mubr.bf16.mxu0 %v2476_v2  ;;  %495 = vmatprep.mubr.bf16.mxu1 %v2476_v2  ;;  %v663_v32 = vpack.c.bf16 %v656_v30, %v655_v29  ;;  %v545_v34 = vld [vmem:[%s2769_s9 + $0x98] sm:$0xff]  ;;  %v657_v35 = vld [vmem:[%s2769_s9 + $0xd0] sm:$0xff]  ;;  %v546_v39 = vld [vmem:[%s2769_s9 + $0xa0] sm:$0xff] }
  0xc4   : > { %v658_v36 = vld [vmem:[%s2769_s9 + $0xd8] sm:$0xff]  ;;  %v551_v37 = vpack.c.bf16 %v545_v34, %v544_v33  ;;  %v547_v40 = vld [vmem:[%s2769_s9 + $0xa8] sm:$0xff]  ;;  %v659_v41 = vld [vmem:[%s2769_s9 + $0xe0] sm:$0xff] }
  0xc5   : > { %v664_v38 = vpack.c.bf16 %v658_v36, %v657_v35  ;;  %v660_v42 = vld [vmem:[%s2769_s9 + $0xe8] sm:$0xff]  ;;  %v552_v43 = vpack.c.bf16 %v547_v40, %v546_v39  ;;  %v548_v45 = vld [vmem:[%s2769_s9 + $0xb0] sm:$0xff]  ;;  %v549_v46 = vld [vmem:[%s2769_s9 + $0xb8] sm:$0xff] }
  0xc6   : > { %v665_v44 = vpack.c.bf16 %v660_v42, %v659_v41  ;;  %v661_v47 = vld [vmem:[%s2769_s9 + $0xf0] sm:$0xff]  ;;  %v662_v48 = vld [vmem:[%s2769_s9 + $0xf8] sm:$0xff]  ;;  %v553_v49 = vpack.c.bf16 %v549_v46, %v548_v45 }
  0xc7   : > { %v666_v50 = vpack.c.bf16 %v662_v48, %v661_v47 }
  0xc9   : > { %1766 = vmatmul.mubr.msk.bf16.gmra.mrb[4].mxu0 %vm343_vm0, %v328_v13  ;;  %1770 = vmatmul.mubr.msk.bf16.gmra.mrb[4].mxu1 %vm343_vm0, %v438_v14 }
  0xca   : > { %408 = vmatprep.mubr.bf16.mxu0 %v2476_v2  ;;  %505 = vmatprep.mubr.bf16.mxu1 %v2476_v2 }
  0xd1   : > { %1767 = vmatmul.mubr.msk.bf16.gmra.mrb[8].mxu0 %vm343_vm0, %v329_v19  ;;  %1771 = vmatmul.mubr.msk.bf16.gmra.mrb[8].mxu1 %vm343_vm0, %v439_v20 }
  0xd2   : > { %418 = vmatprep.mubr.bf16.mxu0 %v2476_v2  ;;  %515 = vmatprep.mubr.bf16.mxu1 %v2476_v2 }
  0xd9   : > { %1768 = vmatmul.mubr.msk.bf16.gmra.mrb[12].mxu0 %vm343_vm0, %v330_v25  ;;  %1772 = vmatmul.mubr.msk.bf16.gmra.mrb[12].mxu1 %vm343_vm0, %v440_v26 }
  0xda   : > { %598 = vmatprep.mubr.bf16.mxu0 %v2476_v2  ;;  %711 = vmatprep.mubr.bf16.mxu1 %v2476_v2 }
  0xe1   : > { %1773 = vmatmul.mubr.msk.bf16.vlgmr.msra.gmra.mrb[16].mxu0 %vm343_vm0, %v550_v31  ;;  %1777 = vmatmul.mubr.msk.bf16.vlgmr.msra.gmra.mrb[16].mxu1 %vm343_vm0, %v663_v32 }
  0xe2   : > { %608 = vmatprep.mubr.bf16.mxu0 %v2476_v2  ;;  %721 = vmatprep.mubr.bf16.mxu1 %v2476_v2 }
  0xe9   : > { %1774 = vmatmul.mubr.msk.bf16.gmra.mrb[20].mxu0 %vm343_vm0, %v551_v37  ;;  %1778 = vmatmul.mubr.msk.bf16.gmra.mrb[20].mxu1 %vm343_vm0, %v664_v38 }
  0xea   : > { %618 = vmatprep.mubr.bf16.mxu0 %v2476_v2  ;;  %731 = vmatprep.mubr.bf16.mxu1 %v2476_v2 }
  0xf1   : > { %1775 = vmatmul.mubr.msk.bf16.gmra.mrb[24].mxu0 %vm343_vm0, %v552_v43  ;;  %1779 = vmatmul.mubr.msk.bf16.gmra.mrb[24].mxu1 %vm343_vm0, %v665_v44 }
  0xf2   : > { %628 = vmatprep.mubr.bf16.mxu0 %v2476_v2  ;;  %741 = vmatprep.mubr.bf16.mxu1 %v2476_v2 }
  0xf9   : > { %1776 = vmatmul.mubr.msk.bf16.gmra.mrb[28].mxu0 %vm343_vm0, %v553_v49  ;;  %1780 = vmatmul.mubr.msk.bf16.gmra.mrb[28].mxu1 %vm343_vm0, %v666_v50 }
 0x194   : > { %v390_v51 = vpop.f32.mrb[0].mxu0  ;;  %v487_v52 = vpop.f32.mrb[0].mxu1 }
 0x195   : > { %v526_v53 = vmax.f32 %v390_v51, %v487_v52  ;;  %v392_v54 = vpop.f32.mrb[1].mxu0  ;;  %v489_v55 = vpop.f32.mrb[1].mxu1 }
 0x196   : > { %v527_v56 = vmax.f32 %v392_v54, %v489_v55  ;;  %v394_v57 = vpop.f32.mrb[2].mxu0  ;;  %v491_v58 = vpop.f32.mrb[2].mxu1 }
 0x197   : > { %v528_v59 = vmax.f32 %v394_v57, %v491_v58  ;;  %v396_v60 = vpop.f32.mrb[3].mxu0  ;;  %v493_v61 = vpop.f32.mrb[3].mxu1 }
 0x198   : > { %v529_v62 = vmax.f32 %v396_v60, %v493_v61 }
 0x19c   : > { %v400_v63 = vpop.f32.mrb[4].mxu0  ;;  %v497_v0 = vpop.f32.mrb[4].mxu1 }
 0x19d   : > { %v530_v1 = vmax.f32 %v400_v63, %v497_v0  ;;  %v402_v2 = vpop.f32.mrb[5].mxu0  ;;  %v499_v3 = vpop.f32.mrb[5].mxu1 }
 0x19e   : > { %v531_v4 = vmax.f32 %v402_v2, %v499_v3  ;;  %v404_v5 = vpop.f32.mrb[6].mxu0  ;;  %v501_v6 = vpop.f32.mrb[6].mxu1 }
 0x19f   : > { %v532_v7 = vmax.f32 %v404_v5, %v501_v6  ;;  %v406_v8 = vpop.f32.mrb[7].mxu0  ;;  %v503_v9 = vpop.f32.mrb[7].mxu1 }
 0x1a0   : > { %v533_v10 = vmax.f32 %v406_v8, %v503_v9 }
 0x1a4   : > { %v2853_v11 = vpop.f32.mrb[8].mxu0  ;;  %v2855_v12 = vpop.f32.mrb[8].mxu1 }
 0x1a5   : > { %v534_v13 = vmax.f32 %v2853_v11, %v2855_v12  ;;  %v2859_v14 = vpop.f32.mrb[9].mxu0  ;;  %v2861_v15 = vpop.f32.mrb[9].mxu1 }
 0x1a6   : > { %v535_v16 = vmax.f32 %v2859_v14, %v2861_v15  ;;  %v2865_v17 = vpop.f32.mrb[10].mxu0  ;;  %v2867_v18 = vpop.f32.mrb[10].mxu1 }
 0x1a7   : > { %v536_v19 = vmax.f32 %v2865_v17, %v2867_v18  ;;  %v2871_v20 = vpop.f32.mrb[11].mxu0  ;;  %v2873_v21 = vpop.f32.mrb[11].mxu1 }
 0x1a8   : > { %v537_v22 = vmax.f32 %v2871_v20, %v2873_v21 }
 0x1ac   : > { %v2877_v23 = vpop.f32.mrb[12].mxu0  ;;  %v2879_v24 = vpop.f32.mrb[12].mxu1 }
 0x1ad   : > { %v538_v25 = vmax.f32 %v2877_v23, %v2879_v24  ;;  %v2883_v26 = vpop.f32.mrb[13].mxu0  ;;  %v2885_v27 = vpop.f32.mrb[13].mxu1 }
 0x1ae   : > { %v539_v28 = vmax.f32 %v2883_v26, %v2885_v27  ;;  %v2889_v29 = vpop.f32.mrb[14].mxu0  ;;  %v2891_v30 = vpop.f32.mrb[14].mxu1 }
 0x1af   : > { %v540_v31 = vmax.f32 %v2889_v29, %v2891_v30  ;;  %v2895_v32 = vpop.f32.mrb[15].mxu0  ;;  %v2897_v33 = vpop.f32.mrb[15].mxu1 }
 0x1b0   : > { %v541_v34 = vmax.f32 %v2895_v32, %v2897_v33 }
 0x1b4   : > { %v600_v35 = vpop.f32.mrb[16].mxu0  ;;  %v713_v36 = vpop.f32.mrb[16].mxu1 }
 0x1b5   : > { %v639_v37 = vmax.f32 %v526_v53, %v600_v35  ;;  %v602_v38 = vpop.f32.mrb[17].mxu0  ;;  %v715_v39 = vpop.f32.mrb[17].mxu1 }
 0x1b6   : > { %v640_v40 = vmax.f32 %v527_v56, %v602_v38  ;;  %v604_v41 = vpop.f32.mrb[18].mxu0  ;;  %v717_v42 = vpop.f32.mrb[18].mxu1 }
 0x1b7   : > { %v752_v43 = vmax.f32 %v639_v37, %v713_v36  ;;  %v641_v44 = vmax.f32 %v528_v59, %v604_v41  ;;  %v606_v45 = vpop.f32.mrb[19].mxu0  ;;  %v719_v46 = vpop.f32.mrb[19].mxu1 }
 0x1b8   : > { %v753_v47 = vmax.f32 %v640_v40, %v715_v39  ;;  %v642_v48 = vmax.f32 %v529_v62, %v606_v45 }
 0x1b9   : > { %v754_v49 = vmax.f32 %v641_v44, %v717_v42 }
 0x1ba   : > { %v755_v50 = vmax.f32 %v642_v48, %v719_v46 }
 0x1bb   : > { %v768_v51 = vpack.c.bf16 %v754_v49, %v752_v43 }
 0x1bc   : > { %v769_v52 = vpack.c.bf16 %v755_v50, %v753_v47  ;;  %v610_v54 = vpop.f32.mrb[20].mxu0  ;;  %v723_v55 = vpop.f32.mrb[20].mxu1 }
 0x1bd   : > { %776 = vst [vmem:[#allocation2] sm:$0xff] %v768_v51  ;;  %v643_v57 = vmax.f32 %v530_v1, %v610_v54  ;;  %v612_v53 = vpop.f32.mrb[21].mxu0  ;;  %v725_v58 = vpop.f32.mrb[21].mxu1 }
 0x1be   : > { %777 = vst [vmem:[#allocation2 + $0x8] sm:$0xff] %v769_v52  ;;  %v644_v56 = vmax.f32 %v531_v4, %v612_v53  ;;  %v614_v60 = vpop.f32.mrb[22].mxu0  ;;  %v727_v61 = vpop.f32.mrb[22].mxu1 }
 0x1bf   : > { %v756_v63 = vmax.f32 %v643_v57, %v723_v55  ;;  %v645_v59 = vmax.f32 %v532_v7, %v614_v60  ;;  %v616_v0 = vpop.f32.mrb[23].mxu0  ;;  %v729_v2 = vpop.f32.mrb[23].mxu1 }
 0x1c0   : > { %v757_v3 = vmax.f32 %v644_v56, %v725_v58  ;;  %v646_v62 = vmax.f32 %v533_v10, %v616_v0 }
 0x1c1   : > { %v758_v5 = vmax.f32 %v645_v59, %v727_v61 }
 0x1c2   : > { %v759_v6 = vmax.f32 %v646_v62, %v729_v2 }
 0x1c3   : > { %v770_v8 = vpack.c.bf16 %v758_v5, %v756_v63 }
 0x1c4   : > { %v771_v9 = vpack.c.bf16 %v759_v6, %v757_v3  ;;  %v620_v35 = vpop.f32.mrb[24].mxu0  ;;  %v733_v36 = vpop.f32.mrb[24].mxu1 }
 0x1c5   : > { %778 = vst [vmem:[#allocation2 + $0x10] sm:$0xff] %v770_v8  ;;  %v647_v1 = vmax.f32 %v534_v13, %v620_v35  ;;  %v622_v4 = vpop.f32.mrb[25].mxu0  ;;  %v735_v37 = vpop.f32.mrb[25].mxu1 }
 0x1c6   : > { %779 = vst [vmem:[#allocation2 + $0x18] sm:$0xff] %v771_v9  ;;  %v648_v7 = vmax.f32 %v535_v16, %v622_v4  ;;  %v624_v38 = vpop.f32.mrb[26].mxu0  ;;  %v737_v10 = vpop.f32.mrb[26].mxu1 }
 0x1c7   : > { %v760_v39 = vmax.f32 %v647_v1, %v733_v36  ;;  %v649_v40 = vmax.f32 %v536_v19, %v624_v38  ;;  %v626_v41 = vpop.f32.mrb[27].mxu0  ;;  %v739_v42 = vpop.f32.mrb[27].mxu1 }
 0x1c8   : > { %v761_v43 = vmax.f32 %v648_v7, %v735_v37  ;;  %v650_v11 = vmax.f32 %v537_v22, %v626_v41 }
 0x1c9   : > { %v762_v12 = vmax.f32 %v649_v40, %v737_v10 }
 0x1ca   : > { %v763_v13 = vmax.f32 %v650_v11, %v739_v42 }
 0x1cb   : > { %v772_v44 = vpack.c.bf16 %v762_v12, %v760_v39 }
 0x1cc   : > { %v773_v45 = vpack.c.bf16 %v763_v13, %v761_v43  ;;  %v630_v14 = vpop.f32.mrb[28].mxu0  ;;  %v743_v15 = vpop.f32.mrb[28].mxu1 }
 0x1cd   : > { %780 = vst [vmem:[#allocation2 + $0x20] sm:$0xff] %v772_v44  ;;  %v651_v16 = vmax.f32 %v538_v25, %v630_v14  ;;  %v632_v17 = vpop.f32.mrb[29].mxu0  ;;  %v745_v18 = vpop.f32.mrb[29].mxu1 }
 0x1ce   : > { %781 = vst [vmem:[#allocation2 + $0x28] sm:$0xff] %v773_v45  ;;  %v652_v19 = vmax.f32 %v539_v28, %v632_v17  ;;  %v634_v20 = vpop.f32.mrb[30].mxu0  ;;  %v747_v21 = vpop.f32.mrb[30].mxu1 }
 0x1cf   : > { %v764_v22 = vmax.f32 %v651_v16, %v743_v15  ;;  %v653_v46 = vmax.f32 %v540_v31, %v634_v20  ;;  %v636_v47 = vpop.f32.mrb[31].mxu0  ;;  %v749_v48 = vpop.f32.mrb[31].mxu1 }
 0x1d0   : > { %v765_v49 = vmax.f32 %v652_v19, %v745_v18  ;;  %v654_v23 = vmax.f32 %v541_v34, %v636_v47 }
 0x1d1   : > { %v766_v24 = vmax.f32 %v653_v46, %v747_v21 }
 0x1d2   : > { %v767_v25 = vmax.f32 %v654_v23, %v749_v48 }
 0x1d3   : > { %v774_v50 = vpack.c.bf16 %v766_v24, %v764_v22 }
 0x1d4   : > { %v775_v51 = vpack.c.bf16 %v767_v25, %v765_v49 }
 0x1d5   : > { %782 = vst [vmem:[#allocation2 + $0x30] sm:$0xff] %v774_v50 }
 0x1d6   : > { %783 = vst [vmem:[#allocation2 + $0x38] sm:$0xff] %v775_v51 }
 0x1d7 PF: > { %v2131_v26 = vld [vmem:[#allocation8] sm:$0xff]   ;;  %s1781_s6 = sshll.u32 %s2449_s24, 7  ;;  %v941_v28 = vld [vmem:[#allocation2 + $0x10] sm:$0xff]  ;;  %vm818_vm1 = vcmask 130048   ;;  %v944_v21 = vld [vmem:[#allocation2 + $0x8] sm:$0xff]  ;;  %vm1053_vm2 = vcmask 523264  }
 0x1d8   : > { %s2927_s12 = scalar_lea.vmem %s2769_s9, %s1781_s6 [#allocation7]  ;;  %v940_v27 = vld [vmem:[#allocation2] sm:$0xff]  ;;  %1864 = vmatprep.subr.bf16.mxu0 %v2131_v26  ;;  %v945_v22 = vld [vmem:[#allocation2 + $0x18] sm:$0xff]  ;;  %s1807_s30 = sld [smem:[#allocation3 + $0x1]] }
 0x1d9   : > { %v2930_v29 = vld [vmem:[%s2927_s12] sm:$0xff]  ;;  %v2933_v30 = vld [vmem:[%s2927_s12 + $0x8] sm:$0xff]  ;;  %v2936_v31 = vld [vmem:[%s2927_s12 + $0x10] sm:$0xff]  ;;  %1882 = vmatprep.subr.bf16.mxu1 %v940_v27  ;;  %1865 = vmatpush3.bf16.msra.mxu0 %v2131_v26  ;;  %s1528_s25 = sld [smem:[#allocation3]]  ;;  %s3293_s16 = sld [smem:[#allocation20_spill]] }
 0x1da   : > { %v802_v32 = vpack.c.bf16 %v2933_v30, %v2930_v29  ;;  %v2941_v33 = vld [vmem:[%s2927_s12 + $0x18] sm:$0xff]  ;;  %v2944_v34 = vld [vmem:[%s2927_s12 + $0x20] sm:$0xff]  ;;  %v2947_v52 = vld [vmem:[%s2927_s12 + $0x28] sm:$0xff]  ;;  %1883 = vmatpush3.bf16.xpose.msra.mxu1 %v940_v27  ;;  %1906 = vmatprep.subr.bf16.mxu0 %v944_v21  ;;  %s1809_s17 = sshll.u32 %s2449_s24, 4  ;;  %s1614_s5 = sshll.u32 %s2786_s7, 4  ;;  %s3175_s5 = int_to_ptr.vmem [resolvable:$true] %s1614_s5 }
 0x1db   : > { %v803_v54 = vpack.c.bf16 %v2941_v33, %v2936_v31  ;;  %v804_v55 = vpack.c.bf16 %v2947_v52, %v2944_v34  ;;  %1884 = vmatprep.subr.bf16.mxu1 %v941_v28  ;;  %v2956_v57 = vld [vmem:[%s2927_s12 + $0x30] sm:$0xff]  ;;  %v2959_v53 = vld [vmem:[%s2927_s12 + $0x38] sm:$0xff]  ;;  %v2963_v58 = vld [vmem:[%s2927_s12 + $0x40] sm:$0xff]  ;;  %s3294_s14 = sld [smem:[#allocation21_spill]]  ;;  %s3295_s10 = sld [smem:[#allocation26_spill]] }
 0x1dc   : > { %1866 = vmatprep.mubr.msk.bf16.mxu0 %vm818_vm1, %v802_v32  ;;  %v2966_v56 = vld [vmem:[%s2927_s12 + $0x48] sm:$0xff]  ;;  %v942_v60 = vld [vmem:[#allocation2 + $0x20] sm:$0xff]  ;;  %v805_v61 = vpack.c.bf16 %v2959_v53, %v2956_v57  ;;  %v2975_v59 = vld [vmem:[%s2927_s12 + $0x50] sm:$0xff] }
 0x1dd   : > { %1867 = vmatmul.mubr.msk.bf16.vlgmr.msra.gmra.mrb[0].mxu0 %vm818_vm1, %v803_v54  ;;  %v806_v63 = vpack.c.bf16 %v2966_v56, %v2963_v58  ;;  %v2978_v0 = vld [vmem:[%s2927_s12 + $0x58] sm:$0xff]  ;;  %v2981_v2 = vld [vmem:[%s2927_s12 + $0x60] sm:$0xff]  ;;  %v2984_v3 = vld [vmem:[%s2927_s12 + $0x68] sm:$0xff] }
 0x1de   : > { %1870 = vmatprep.mubr.msk.bf16.mxu0 %vm818_vm1, %v804_v55  ;;  %v943_v62 = vld [vmem:[#allocation2 + $0x30] sm:$0xff]  ;;  %v807_v5 = vpack.c.bf16 %v2978_v0, %v2975_v59  ;;  %v808_v6 = vpack.c.bf16 %v2984_v3, %v2981_v2  ;;  %v2996_v9 = vld [vmem:[%s2927_s12 + $0x78] sm:$0xff]  ;;  %1907 = vmatpush3.bf16.msra.mxu0 %v944_v21  ;;  %s1548_s8 = ssub.f32 1.0, %s1807_s30 }
 0x1df   : > { %v2993_v8 = vld [vmem:[%s2927_s12 + $0x70] sm:$0xff]  ;;  %1908 = vmatprep.subr.bf16.mxu0 %v945_v22  ;;  %s1530_s18 = smul.f32 %s1807_s30, %s1528_s25  ;;  %s1810_s15 = sshll.u32 %s3293_s16, 5 }
 0x1e0   : > { %v809_v35 = vpack.c.bf16 %v2996_v9, %v2993_v8  ;;  %s1611_s2 = sadd.s32 %s1810_s15, %s1809_s17  ;;  %s3185_s12 = scalar_lea.sflag [#allocation5], %s310_s3 }
 0x1e1   : > { %s1811_s24 = sshll.u32 %s1611_s2, 7  ;;  %s2331_s30 = scalar_lea.vmem %s3175_s5, 2048 }
 0x1e2   : > { %1885 = vmatpush3.bf16.xpose.msra.mxu1 %v941_v28  ;;  %1909 = vmatpush3.bf16.msra.mxu0 %v945_v22  ;;  %s3173_s6 = scalar_lea.hbm %s3295_s10, %s1811_s24  ;;  %p2332_p3 = scmp.ne.s32.totalorder %s3175_s5, %s2331_s30 }
 0x1e3   : > { %1886 = vmatprep.subr.bf16.mxu1 %v942_v60  ;;  %p3296_p5 = scmp.ne.s32.totalorder %s3294_s14, 0  ;;  %s2477_s25 = smov [#allocation13]  }
 0x1e5   : > { %1871 = vmatmul.mubr.msk.bf16.gmra.mrb[4].mxu0 %vm818_vm1, %v805_v61  ;;  %p2333_p7 = pnand %p2332_p3, %p3296_p5 }
 0x1e6   : > { %1874 = vmatprep.mubr.msk.bf16.mxu0 %vm818_vm1, %v806_v63 }
 0x1e7   : > { %p2334_p13 = pneg %p2333_p7 }
 0x1ea   : > { %1887 = vmatpush3.bf16.xpose.msra.mxu1 %v942_v60 }
 0x1eb   : > { %1888 = vmatprep.subr.bf16.mxu1 %v943_v62 }
 0x1ed   : > { %1875 = vmatmul.mubr.msk.bf16.gmra.mrb[8].mxu0 %vm818_vm1, %v807_v5 }
 0x1ee   : > { %1878 = vmatprep.mubr.msk.bf16.mxu0 %vm818_vm1, %v808_v6 }
 0x1f2   : > { %1889 = vmatpush3.bf16.xpose.msra.mxu1 %v943_v62 }
 0x1f5   : > { %1879 = vmatmul.mubr.msk.bf16.gmra.mrb[12].mxu0 %vm818_vm1, %v809_v35 }
 0x2b0   : > { %v1868_v36 = vpop.f32.mrb[0].mxu0 }
 0x2b1   : > { %v877_v1 = vpop.f32.mrb[1].mxu0 }
 0x2b2   : > { %v1869_v4 = vpop.f32.mrb[2].mxu0 }
 0x2b3   : > { %v949_v37 = vpack.c.bf16 %v1869_v4, %v1868_v36  ;;  %v880_v7 = vpop.f32.mrb[3].mxu0 }
 0x2b4   : > { %v948_v38 = vpack.c.bf16 %v880_v7, %v877_v1 }
 0x2b6   : > { %1890 = vmatprep.mubr.bf16.mxu1 %v948_v38 }
 0x2b7   : > { %1891 = vmatmul.mubr.bf16.vlgmr.msra.gmra.mrb[0].mxu1 %v949_v37 }
 0x2b8   : > { %v1872_v10 = vpop.f32.mrb[4].mxu0 }
 0x2b9   : > { %v893_v39 = vpop.f32.mrb[5].mxu0 }
 0x2ba   : > { %v1873_v40 = vpop.f32.mrb[6].mxu0 }
 0x2bb   : > { %v951_v41 = vpack.c.bf16 %v1873_v40, %v1872_v10  ;;  %v896_v42 = vpop.f32.mrb[7].mxu0 }
 0x2bc   : > { %v950_v43 = vpack.c.bf16 %v896_v42, %v893_v39 }
 0x2be   : > { %1894 = vmatprep.mubr.bf16.mxu1 %v950_v43  ;;  %v947_v43 = vld [vmem:[#allocation2 + $0x38] sm:$0xff] }
 0x2bf   : > { %1895 = vmatmul.mubr.bf16.gmra.mrb[4].mxu1 %v951_v41  ;;  %v946_v41 = vld [vmem:[#allocation2 + $0x28] sm:$0xff] }
 0x2c0   : > { %v1876_v11 = vpop.f32.mrb[8].mxu0  ;;  %1910 = vmatprep.subr.bf16.mxu0 %v946_v41 }
 0x2c1   : > { %v909_v12 = vpop.f32.mrb[9].mxu0  ;;  %1911 = vmatpush3.bf16.msra.mxu0 %v946_v41 }
 0x2c2   : > { %v1877_v13 = vpop.f32.mrb[10].mxu0  ;;  %1912 = vmatprep.subr.bf16.mxu0 %v947_v43 }
 0x2c3   : > { %v953_v44 = vpack.c.bf16 %v1877_v13, %v1876_v11  ;;  %v912_v45 = vpop.f32.mrb[11].mxu0 }
 0x2c4   : > { %v952_v14 = vpack.c.bf16 %v912_v45, %v909_v12 }
 0x2c5   : > { %1913 = vmatpush3.bf16.msra.mxu0 %v947_v43 }
 0x2c6   : > { %1898 = vmatprep.mubr.bf16.mxu1 %v952_v14 }
 0x2c7   : > { %1899 = vmatmul.mubr.bf16.gmra.mrb[8].mxu1 %v953_v44 }
 0x2c8   : > { %v1880_v15 = vpop.f32.mrb[12].mxu0 }
 0x2c9   : > { %v925_v16 = vpop.f32.mrb[13].mxu0 }
 0x2ca   : > { %v1881_v17 = vpop.f32.mrb[14].mxu0 }
 0x2cb   : > { %v955_v18 = vpack.c.bf16 %v1881_v17, %v1880_v15  ;;  %v928_v19 = vpop.f32.mrb[15].mxu0 }
 0x2cc   : > { %v954_v20 = vpack.c.bf16 %v928_v19, %v925_v16 }
 0x2ce   : > { %1902 = vmatprep.mubr.bf16.mxu1 %v954_v20 }
 0x2cf   : > { %1903 = vmatmul.mubr.bf16.gmra.mrb[12].mxu1 %v955_v18 }
 0x38a   : > { %v1892_v46 = vpop.f32.mrb[0].mxu1 }
 0x38b   : > { %v990_v47 = vpop.f32.mrb[1].mxu1  ;;  %v1060_v48 = vsel %vm1053_vm2, %v1892_v46, -inf }
 0x38c   : > { %1061 = vmax.xlane.f32.xlu1 %v1060_v48  ;;  %v1893_v49 = vpop.f32.mrb[2].mxu1  ;;  %v1054_v23 = vsel %vm1053_vm2, %v990_v47, -inf }
 0x38d   : > { %1055 = vmax.xlane.f32.xlu0 %v1054_v23  ;;  %v993_v24 = vpop.f32.mrb[3].mxu1  ;;  %v1063_v25 = vsel %vm1053_vm2, %v1893_v49, -inf }
 0x38e   : > { %v1057_v50 = vsel %vm1053_vm2, %v993_v24, -inf }
 0x390   : > { %1064 = vmax.xlane.f32.xlu1 %v1063_v25 }
 0x391   : > { %1058 = vmax.xlane.f32.xlu0 %v1057_v50 }
 0x392   : > { %v3005_v51 = vpop.f32.mrb[4].mxu1 }
 0x393   : > { %v1006_v26 = vpop.f32.mrb[5].mxu1  ;;  %v1072_v55 = vsel %vm1053_vm2, %v3005_v51, -inf }
 0x394   : > { %v3007_v27 = vpop.f32.mrb[6].mxu1  ;;  %v1066_v28 = vsel %vm1053_vm2, %v1006_v26, -inf }
 0x395   : > { %1067 = vmax.xlane.f32.xlu0 %v1066_v28  ;;  %v1009_v32 = vpop.f32.mrb[7].mxu1  ;;  %v1075_v61 = vsel %vm1053_vm2, %v3007_v27, -inf }
 0x396   : > { %v1069_v54 = vsel %vm1053_vm2, %v1009_v32, -inf }
 0x397   : > { %1070 = vmax.xlane.f32.xlu1 %v1069_v54 }
 0x399   : > { %1073 = vmax.xlane.f32.xlu0 %v1072_v55 }
 0x39a   : > { %v3013_v60 = vpop.f32.mrb[8].mxu1 }
 0x39b   : > { %1076 = vmax.xlane.f32.xlu1 %v1075_v61  ;;  %v3017_v63 = vpop.f32.mrb[9].mxu1  ;;  %v1084_v36 = vsel %vm1053_vm2, %v3013_v60, -inf }
 0x39c   : > { %v3019_v62 = vpop.f32.mrb[10].mxu1  ;;  %v1078_v5 = vsel %vm1053_vm2, %v3017_v63, -inf }
 0x39d   : > { %1079 = vmax.xlane.f32.xlu0 %v1078_v5  ;;  %v3023_v6 = vpop.f32.mrb[11].mxu1  ;;  %v1087_v4 = vsel %vm1053_vm2, %v3019_v62, -inf }
 0x39e   : > { %v1081_v35 = vsel %vm1053_vm2, %v3023_v6, -inf }
 0x39f   : > { %1082 = vmax.xlane.f32.xlu1 %v1081_v35 }
 0x3a1   : > { %1085 = vmax.xlane.f32.xlu0 %v1084_v36 }
 0x3a2   : > { %v3029_v1 = vpop.f32.mrb[12].mxu1 }
 0x3a3   : > { %1088 = vmax.xlane.f32.xlu1 %v1087_v4  ;;  %v3033_v37 = vpop.f32.mrb[13].mxu1  ;;  %v1096_v40 = vsel %vm1053_vm2, %v3029_v1, -inf }
 0x3a4   : > { %v3035_v7 = vpop.f32.mrb[14].mxu1  ;;  %v1090_v38 = vsel %vm1053_vm2, %v3033_v37, -inf }
 0x3a5   : > { %1091 = vmax.xlane.f32.xlu0 %v1090_v38  ;;  %v3039_v10 = vpop.f32.mrb[15].mxu1  ;;  %v1099_v42 = vsel %vm1053_vm2, %v3035_v7, -inf }
 0x3a6   : > { %v1093_v39 = vsel %vm1053_vm2, %v3039_v10, -inf }
 0x3a7   : > { %1094 = vmax.xlane.f32.xlu1 %v1093_v39 }
 0x3a9   : > { %1097 = vmax.xlane.f32.xlu0 %v1096_v40 }
 0x3ab   : > { %1100 = vmax.xlane.f32.xlu1 %v1099_v42 }
 0x419   : > { %v1062_v11 = vpop.xlane.xlu1 %1061 }
 0x41a   : > { %v1104_v12 = vsub.f32 %v1892_v46, %v1062_v11  ;;  %v1056_v13 = vpop.xlane.xlu0 %1055 }
 0x41b   : > { %v1102_v44 = vsub.f32 %v990_v47, %v1056_v13 }
 0x41c   : > { %v1122_v45 = vmul.f32 1.442695, %v1104_v12 }
 0x41d   : > { %v1118_v14 = vmul.f32 1.442695, %v1102_v44  ;;  %v1065_v15 = vpop.xlane.xlu1 %1064 }
 0x41e   : > { %v1105_v16 = vsub.f32 %v1893_v49, %v1065_v15  ;;  %v1059_v17 = vpop.xlane.xlu0 %1058 }
 0x41f   : > { %2140 = vpow2.f32 %v1118_v14  ;;  %v1103_v18 = vsub.f32 %v993_v24, %v1059_v17 }
 0x420   : > { %v1124_v19 = vmul.f32 1.442695, %v1105_v16  ;;  %2142 = vpow2.f32 %v1122_v45 }
 0x421   : > { %v1120_v20 = vmul.f32 1.442695, %v1103_v18 }
 0x422   : > { %2144 = vpow2.f32 %v1124_v19  ;;  %v1068_v21 = vpop.xlane.xlu0 %1067 }
 0x423   : > { %2146 = vpow2.f32 %v1120_v20  ;;  %v1106_v22 = vsub.f32 %v1006_v26, %v1068_v21 }
 0x424   : > { %v1071_v48 = vpop.xlane.xlu1 %1070 }
 0x425   : > { %v1126_v23 = vmul.f32 1.442695, %v1106_v22  ;;  %v1107_v25 = vsub.f32 %v1009_v32, %v1071_v48 }
 0x426   : > { %v1074_v46 = vpop.xlane.xlu0 %1073 }
 0x427   : > { %v1128_v50 = vmul.f32 1.442695, %v1107_v25  ;;  %v1108_v47 = vsub.f32 %v3005_v51, %v1074_v46  ;;  %2148 = vpow2.f32 %v1126_v23 }
 0x428   : > { %v1077_v28 = vpop.xlane.xlu1 %1076 }
 0x429   : > { %v2141_v49 = vpop.eup %2140  ;;  %2150 = vpow2.f32 %v1128_v50  ;;  %v1130_v54 = vmul.f32 1.442695, %v1108_v47  ;;  %v1109_v24 = vsub.f32 %v3007_v27, %v1077_v28 }
 0x42a   : > { %v1080_v55 = vpop.xlane.xlu0 %1079  ;;  %v1150_v61 = vsel %vm1053_vm2, %v2141_v49, 0.0  ;;  %v3050_v5 = vpop.eup %2142 }
 0x42b   : > { %2152 = vpow2.f32 %v1130_v54  ;;  %v1132_v26 = vmul.f32 1.442695, %v1109_v24  ;;  %v1110_v32 = vsub.f32 %v3017_v63, %v1080_v55  ;;  %1151 = vadd.xlane.f32.xlu0 %v1150_v61 }
 0x42c   : > { %v3053_v35 = vpop.eup %2144  ;;  %v1083_v51 = vpop.xlane.xlu1 %1082 }
 0x42d   : > { %v2147_v36 = vpop.eup %2146  ;;  %v1199_v4 = vpack.c.bf16 %v3053_v35, %v3050_v5  ;;  %2154 = vpow2.f32 %v1132_v26  ;;  %v1134_v38 = vmul.f32 1.442695, %v1110_v32  ;;  %v1111_v27 = vsub.f32 %v3023_v6, %v1083_v51 }
 0x42e   : > { %v1086_v39 = vpop.xlane.xlu0 %1085  ;;  %v1153_v40 = vsel %vm1053_vm2, %v2147_v36, 0.0  ;;  %v1198_v41 = vpack.c.bf16 %v2147_v36, %v2141_v49 }
 0x42f   : > { %v1136_v42 = vmul.f32 1.442695, %v1111_v27  ;;  %v1112_v43 = vsub.f32 %v3013_v60, %v1086_v39  ;;  %1154 = vadd.xlane.f32.xlu1 %v1153_v40  ;;  %2156 = vpow2.f32 %v1134_v38  ;;  %v1156_v27 = vsel %vm1053_vm2, %v3050_v5, 0.0 }
 0x430   : > { %1914 = vmatprep.mubr.msk.bf16.mxu0 %vm1053_vm2, %v1198_v41  ;;  %v1089_v63 = vpop.xlane.xlu1 %1088  ;;  %v1159_v40 = vsel %vm1053_vm2, %v3053_v35, 0.0  ;;  %v2134_v35 = vld [vmem:[#allocation11 + $0x10] sm:$0xff]  }
 0x431   : > { %2158 = vpow2.f32 %v1136_v42  ;;  %v1138_v11 = vmul.f32 1.442695, %v1112_v43  ;;  %v1113_v12 = vsub.f32 %v3019_v62, %v1089_v63  ;;  %1915 = vmatmul.mubr.msk.bf16.vlgmr.msra.gmra.mrb[16].mxu0 %vm1053_vm2, %v1199_v4  ;;  %v2149_v13 = vpop.eup %2148 }
 0x432   : > { %v1092_v6 = vpop.xlane.xlu0 %1091  ;;  %v1162_v50 = vsel %vm1053_vm2, %v2149_v13, 0.0 }
 0x433   : > { %v2151_v44 = vpop.eup %2150  ;;  %2160 = vpow2.f32 %v1138_v11  ;;  %v1140_v45 = vmul.f32 1.442695, %v1113_v12  ;;  %v1114_v14 = vsub.f32 %v3033_v37, %v1092_v6  ;;  %v2132_v11 = vld [vmem:[#allocation11] sm:$0xff]   ;;  %v2133_v12 = vld [vmem:[#allocation11 + $0x8] sm:$0xff]  }
 0x434   : > { %v1095_v15 = vpop.xlane.xlu1 %1094  ;;  %v1200_v60 = vpack.c.bf16 %v2151_v44, %v2149_v13  ;;  %1930 = vmatprep.subr.bf16.mxu0 %v2132_v11  ;;  %1962 = vmatprep.subr.bf16.mxu1 %v2132_v11  ;;  %v2135_v13 = vld [vmem:[#allocation11 + $0x18] sm:$0xff]   ;;  %v2136_v6 = vld [vmem:[#allocation11 + $0x20] sm:$0xff]  }
 0x435   : > { %v2153_v16 = vpop.eup %2152  ;;  %2162 = vpow2.f32 %v1140_v45  ;;  %v1142_v17 = vmul.f32 1.442695, %v1114_v14  ;;  %v1115_v18 = vsub.f32 %v3039_v10, %v1095_v15  ;;  %1931 = vmatpush3.bf16.msra.mxu0 %v2132_v11  ;;  %1970 = vmatpush3.bf16.msra.mxu1 %v2132_v11  ;;  %v2138_v45 = vld [vmem:[#allocation11 + $0x30] sm:$0xff]   ;;  %v2139_v14 = vld [vmem:[#allocation11 + $0x38] sm:$0xff]  }
 0x436   : > { %1918 = vmatprep.mubr.msk.bf16.mxu0 %vm1053_vm2, %v1200_v60  ;;  %v1098_v19 = vpop.xlane.xlu0 %1097  ;;  %v1168_v62 = vsel %vm1053_vm2, %v2153_v16, 0.0  ;;  %1932 = vmatprep.subr.bf16.mxu0 %v2133_v12 }
 0x437   : > { %v2155_v20 = vpop.eup %2154  ;;  %v1144_v21 = vmul.f32 1.442695, %v1115_v18  ;;  %v1116_v22 = vsub.f32 %v3029_v1, %v1098_v19  ;;  %1169 = vadd.xlane.f32.xlu0 %v1168_v62  ;;  %2164 = vpow2.f32 %v1142_v17  ;;  %v1165_v1 = vsel %vm1053_vm2, %v2151_v44, 0.0  ;;  %1963 = vmatprep.subr.bf16.mxu1 %v2133_v12  ;;  %v2137_v44 = vld [vmem:[#allocation11 + $0x28] sm:$0xff]  }
 0x438   : > { %v1101_v48 = vpop.xlane.xlu1 %1100  ;;  %v1171_v37 = vsel %vm1053_vm2, %v2155_v20, 0.0  ;;  %v1201_v23 = vpack.c.bf16 %v2155_v20, %v2153_v16 }
 0x439   : > { %2166 = vpow2.f32 %v1144_v21  ;;  %v1146_v25 = vmul.f32 1.442695, %v1116_v22  ;;  %v1117_v46 = vsub.f32 %v3035_v7, %v1101_v48  ;;  %1172 = vadd.xlane.f32.xlu1 %v1171_v37  ;;  %v2157_v10 = vpop.eup %2156  ;;  %1933 = vmatpush3.bf16.msra.mxu0 %v2133_v12 }
 0x43a   : > { %1919 = vmatmul.mubr.msk.bf16.gmra.mrb[20].mxu0 %vm1053_vm2, %v1201_v23  ;;  %v1174_v32 = vsel %vm1053_vm2, %v2157_v10, 0.0  ;;  %1971 = vmatpush3.bf16.msra.mxu1 %v2133_v12 }
 0x43b   : > { %v2159_v47 = vpop.eup %2158  ;;  %v1148_v28 = vmul.f32 1.442695, %v1117_v46  ;;  %1163 = vadd.xlane.f32.xlu0 %v1162_v50  ;;  %2168 = vpow2.f32 %v1146_v25  ;;  %1934 = vmatprep.subr.bf16.mxu0 %v2134_v35 }
 0x43c   : > { %v1202_v49 = vpack.c.bf16 %v2159_v47, %v2157_v10  ;;  %v1177_v36 = vsel %vm1053_vm2, %v2159_v47, 0.0  ;;  %1964 = vmatprep.subr.bf16.mxu1 %v2134_v35 }
 0x43d   : > { %v2161_v54 = vpop.eup %2160  ;;  %2170 = vpow2.f32 %v1148_v28  ;;  %1166 = vadd.xlane.f32.xlu1 %v1165_v1  ;;  %1935 = vmatpush3.bf16.msra.mxu0 %v2134_v35 }
 0x43e   : > { %1922 = vmatprep.mubr.msk.bf16.mxu0 %vm1053_vm2, %v1202_v49  ;;  %v1180_v7 = vsel %vm1053_vm2, %v2161_v54, 0.0  ;;  %1972 = vmatpush3.bf16.msra.mxu1 %v2134_v35 }
 0x43f   : > { %v2163_v24 = vpop.eup %2162  ;;  %1181 = vadd.xlane.f32.xlu0 %v1180_v7  ;;  %1936 = vmatprep.subr.bf16.mxu0 %v2135_v13 }
 0x440   : > { %v1183_v55 = vsel %vm1053_vm2, %v2163_v24, 0.0  ;;  %v1203_v61 = vpack.c.bf16 %v2163_v24, %v2161_v54  ;;  %1965 = vmatprep.subr.bf16.mxu1 %v2135_v13 }
 0x441   : > { %1184 = vadd.xlane.f32.xlu1 %v1183_v55  ;;  %v2165_v26 = vpop.eup %2164  ;;  %1937 = vmatpush3.bf16.msra.mxu0 %v2135_v13 }
 0x442   : > { %1923 = vmatmul.mubr.msk.bf16.gmra.mrb[24].mxu0 %vm1053_vm2, %v1203_v61  ;;  %v1186_v42 = vsel %vm1053_vm2, %v2165_v26, 0.0  ;;  %1973 = vmatpush3.bf16.msra.mxu1 %v2135_v13 }
 0x443   : > { %v2167_v51 = vpop.eup %2166  ;;  %1175 = vadd.xlane.f32.xlu0 %v1174_v32  ;;  %1938 = vmatprep.subr.bf16.mxu0 %v2136_v6 }
 0x444   : > { %v1204_v4 = vpack.c.bf16 %v2167_v51, %v2165_v26  ;;  %v1189_v43 = vsel %vm1053_vm2, %v2167_v51, 0.0  ;;  %1966 = vmatprep.subr.bf16.mxu1 %v2136_v6 }
 0x445   : > { %1178 = vadd.xlane.f32.xlu1 %v1177_v36  ;;  %v2169_v38 = vpop.eup %2168  ;;  %1939 = vmatpush3.bf16.msra.mxu0 %v2136_v6 }
 0x446   : > { %1926 = vmatprep.mubr.msk.bf16.mxu0 %vm1053_vm2, %v1204_v4  ;;  %v1192_v63 = vsel %vm1053_vm2, %v2169_v38, 0.0  ;;  %1974 = vmatpush3.bf16.msra.mxu1 %v2136_v6 }
 0x447   : > { %v2171_v39 = vpop.eup %2170  ;;  %1157 = vadd.xlane.f32.xlu0 %v1156_v27  ;;  %1940 = vmatprep.subr.bf16.mxu0 %v2137_v44 }
 0x448   : > { %v1205_v41 = vpack.c.bf16 %v2171_v39, %v2169_v38  ;;  %v1195_v5 = vsel %vm1053_vm2, %v2171_v39, 0.0  ;;  %1967 = vmatprep.subr.bf16.mxu1 %v2137_v44 }
 0x449   : > { %1160 = vadd.xlane.f32.xlu1 %v1159_v40  ;;  %1941 = vmatpush3.bf16.msra.mxu0 %v2137_v44 }
 0x44a   : > { %1927 = vmatmul.mubr.msk.bf16.gmra.mrb[28].mxu0 %vm1053_vm2, %v1205_v41  ;;  %1975 = vmatpush3.bf16.msra.mxu1 %v2137_v44 }
 0x44b   : > { %1187 = vadd.xlane.f32.xlu0 %v1186_v42  ;;  %1942 = vmatprep.subr.bf16.mxu0 %v2138_v45 }
 0x44c   : > { %1968 = vmatprep.subr.bf16.mxu1 %v2138_v45 }
 0x44d   : > { %1190 = vadd.xlane.f32.xlu1 %v1189_v43  ;;  %1943 = vmatpush3.bf16.msra.mxu0 %v2138_v45 }
 0x44e   : > { %1976 = vmatpush3.bf16.msra.mxu1 %v2138_v45  ;;  %1944 = vmatprep.subr.bf16.mxu0 %v2139_v14 }
 0x44f   : > { %1193 = vadd.xlane.f32.xlu0 %v1192_v63  ;;  %1969 = vmatprep.subr.bf16.mxu1 %v2139_v14 }
 0x451   : > { %1196 = vadd.xlane.f32.xlu1 %v1195_v5  ;;  %1945 = vmatpush3.bf16.msra.mxu0 %v2139_v14 }
 0x452   : > { %1977 = vmatpush3.bf16.msra.mxu1 %v2139_v14 }
 0x4b8   : > { %v1152_v15 = vpop.xlane.xlu0 %1151 }
 0x4b9   : > { %2172 = vrcp.f32 %v1152_v15 }
 0x4bc   : > { %v1155_v60 = vpop.xlane.xlu1 %1154 }
 0x4c3   : > { %v2173_v23 = vpop.eup %2172 }
 0x4c4   : > { %v1170_v16 = vpop.xlane.xlu0 %1169 }
 0x4c6   : > { %v1173_v17 = vpop.xlane.xlu1 %1172 }
 0x4c8   : > { %v1164_v18 = vpop.xlane.xlu0 %1163 }
 0x4ca   : > { %v1167_v19 = vpop.xlane.xlu1 %1166 }
 0x4cc   : > { %v1182_v62 = vpop.xlane.xlu0 %1181 }
 0x4ce   : > { %v1185_v20 = vpop.xlane.xlu1 %1184 }
 0x4d0   : > { %v1176_v21 = vpop.xlane.xlu0 %1175 }
 0x4d2   : > { %v1179_v22 = vpop.xlane.xlu1 %1178 }
 0x4d4   : > { %v1158_v48 = vpop.xlane.xlu0 %1157 }
 0x4d5   : > { %2174 = vrcp.f32 %v1158_v48 }
 0x4d6   : > { %v1161_v37 = vpop.xlane.xlu1 %1160 }
 0x4d7   : > { %2176 = vrcp.f32 %v1161_v37 }
 0x4d8   : > { %2178 = vrcp.f32 %v1155_v60  ;;  %v1188_v26 = vpop.xlane.xlu0 %1187 }
 0x4d9   : > { %2180 = vrcp.f32 %v1170_v16 }
 0x4da   : > { %2182 = vrcp.f32 %v1173_v17  ;;  %v1191_v32 = vpop.xlane.xlu1 %1190 }
 0x4db   : > { %2184 = vrcp.f32 %v1164_v18 }
 0x4dc   : > { %2186 = vrcp.f32 %v1167_v19  ;;  %v1194_v63 = vpop.xlane.xlu0 %1193 }
 0x4dd   : > { %2188 = vrcp.f32 %v1182_v62 }
 0x4de   : > { %2190 = vrcp.f32 %v1185_v20  ;;  %v1197_v12 = vpop.xlane.xlu1 %1196 }
 0x4df   : > { %v2175_v46 = vpop.eup %2174  ;;  %2192 = vrcp.f32 %v1176_v21 }
 0x4e0   : > { %2194 = vrcp.f32 %v1179_v22 }
 0x4e1   : > { %v2177_v50 = vpop.eup %2176  ;;  %2196 = vrcp.f32 %v1188_v26 }
 0x4e2   : > { %v2179_v28 = vpop.eup %2178  ;;  %2198 = vrcp.f32 %v1194_v63 }
 0x4e3   : > { %v2181_v51 = vpop.eup %2180  ;;  %2200 = vrcp.f32 %v1197_v12 }
 0x4e4   : > { %v2183_v4 = vpop.eup %2182  ;;  %2202 = vrcp.f32 %v1191_v32 }
 0x4e5   : > { %v2185_v27 = vpop.eup %2184 }
 0x4e6   : > { %v2187_v40 = vpop.eup %2186 }
 0x4e7   : > { %v2189_v6 = vpop.eup %2188 }
 0x4e8   : > { %v2191_v45 = vpop.eup %2190 }
 0x4e9   : > { %v2193_v15 = vpop.eup %2192 }
 0x4ea   : > { %v2195_v16 = vpop.eup %2194 }
 0x4eb   : > { %v2197_v48 = vpop.eup %2196 }
 0x504   : > { %v1916_v25 = vpop.f32.mrb[16].mxu0 }
 0x505   : > { %v1264_v10 = vpop.f32.mrb[17].mxu0  ;;  %v1345_v1 = vmul.f32 %v2175_v46, %v1916_v25 }
 0x506   : > { %v1917_v47 = vpop.f32.mrb[18].mxu0  ;;  %v1343_v7 = vmul.f32 %v2173_v23, %v1264_v10  ;;  %v2199_v23 = vpop.eup %2198 }
 0x507   : > { %v1346_v49 = vmul.f32 %v2177_v50, %v1917_v47  ;;  %v1267_v54 = vpop.f32.mrb[19].mxu0  ;;  %v2201_v46 = vpop.eup %2200 }
 0x508   : > { %v1344_v24 = vmul.f32 %v2179_v28, %v1267_v54  ;;  %v2203_v50 = vpop.eup %2202 }
 0x509   : > { %v1360_v55 = vpack.c.bf16 %v1346_v49, %v1345_v1 }
 0x50a   : > { %v1359_v61 = vpack.c.bf16 %v1344_v24, %v1343_v7 }
 0x50c   : > { %1946 = vmatprep.mubr.bf16.mxu0 %v1359_v61  ;;  %v3091_v61 = vstv %s1530_s18 }
 0x50d   : > { %v1920_v36 = vpop.f32.mrb[20].mxu0  ;;  %1947 = vmatmul.mubr.bf16.vlgmr.msra.gmra.mrb[32].mxu0 %v1360_v55  ;;  %v3089_v55 = vstv %s1548_s8  ;;  %s2335_s8 = sshll.u32 %s2477_s25, 4  ;;  %s2336_s8 = int_to_ptr.vmem [resolvable:$false] %s2335_s8 }
 0x50e   : > { %v1280_v38 = vpop.f32.mrb[21].mxu0  ;;  %v1349_v41 = vmul.f32 %v2181_v51, %v1920_v36  ;;  %v1552_v26 = vmul.f32 %v3089_v55, %v2936_v31  ;;  %v1550_v32 = vmul.f32 %v3089_v55, %v2930_v29  ;;  %s2337_s18 = scalar_lea.vmem %s2336_s8, 4096  ;;  %p2338_p8 = scmp.lt.s32.totalorder %s3175_s5, %s2336_s8 }
 0x50f   : > { %v1921_v39 = vpop.f32.mrb[22].mxu0  ;;  %v1347_v5 = vmul.f32 %v2185_v27, %v1280_v38  ;;  %v1553_v38 = vmul.f32 %v3089_v55, %v2941_v33  ;;  %v1551_v27 = vmul.f32 %v3089_v55, %v2933_v30  ;;  %v1556_v30 = vmul.f32 %v3089_v55, %v2956_v57  ;;  %p2339_p9 = scmp.lt.s32.totalorder %s2337_s18, %s2331_s30 }
 0x510   : > { %v1350_v42 = vmul.f32 %v2183_v4, %v1921_v39  ;;  %v1283_v43 = vpop.f32.mrb[23].mxu0 }
 0x511   : > { %v1348_v11 = vmul.f32 %v2187_v40, %v1283_v43  ;;  %p2340_p1 = por %p2339_p9, %p2338_p8 }
 0x512   : > { %v1362_v35 = vpack.c.bf16 %v1350_v42, %v1349_v41 }
 0x513   : > { %v1361_v13 = vpack.c.bf16 %v1348_v11, %v1347_v5  ;;  %v1554_v11 = vmul.f32 %v3089_v55, %v2944_v34  ;;  %p2341_p6 = pnand %p2340_p1, %p2334_p13 }
 0x515   : > { %v1924_v44 = vpop.f32.mrb[24].mxu0  ;;  %1950 = vmatprep.mubr.bf16.mxu1 %v1361_v13  ;;  %v1557_v13 = vmul.f32 %v3089_v55, %v2959_v53  ;;  %v1560_v53 = vmul.f32 %v3089_v55, %v2975_v59  ;;  %v1559_v59 = vmul.f32 %v3089_v55, %v2966_v56  ;;  %v1564_v56 = vmul.f32 %v3089_v55, %v2993_v8 }
 0x516   : > { %v1296_v14 = vpop.f32.mrb[25].mxu0  ;;  %1951 = vmatmul.mubr.bf16.vlgmr.msra.gmra.mrb[16].mxu1 %v1362_v35  ;;  %v1353_v17 = vmul.f32 %v2189_v6, %v1924_v44  ;;  %v1563_v8 = vmul.f32 %v3089_v55, %v2984_v3 }
 0x517   : > { %v1925_v60 = vpop.f32.mrb[26].mxu0  ;;  %v1351_v62 = vmul.f32 %v2193_v15, %v1296_v14 }
 0x518   : > { %v1354_v18 = vmul.f32 %v2191_v45, %v1925_v60  ;;  %v1299_v19 = vpop.f32.mrb[27].mxu0  ;;  %v1555_v45 = vmul.f32 %v3089_v55, %v2947_v52 }
 0x519   : > { %v1352_v20 = vmul.f32 %v2195_v16, %v1299_v19 }
 0x51a   : > { %v1364_v21 = vpack.c.bf16 %v1354_v18, %v1353_v17  ;;  %v1558_v18 = vmul.f32 %v3089_v55, %v2963_v58 }
 0x51b   : > { %v1363_v22 = vpack.c.bf16 %v1352_v20, %v1351_v62  ;;  %v1561_v20 = vmul.f32 %v3089_v55, %v2978_v0 }
 0x51d   : > { %v1928_v37 = vpop.f32.mrb[28].mxu0  ;;  %1954 = vmatprep.mubr.bf16.mxu1 %v1363_v22 }
 0x51e   : > { %v1312_v25 = vpop.f32.mrb[29].mxu0  ;;  %1955 = vmatmul.mubr.bf16.gmra.mrb[20].mxu1 %v1364_v21  ;;  %v1357_v47 = vmul.f32 %v2199_v23, %v1928_v37 }
 0x51f   : > { %v1929_v10 = vpop.f32.mrb[30].mxu0  ;;  %v1355_v49 = vmul.f32 %v2197_v48, %v1312_v25 }
 0x520   : > { %v1358_v28 = vmul.f32 %v2201_v46, %v1929_v10  ;;  %v1315_v1 = vpop.f32.mrb[31].mxu0 }
 0x521   : > { %v1356_v54 = vmul.f32 %v2203_v50, %v1315_v1  ;;  %v1562_v50 = vmul.f32 %v3089_v55, %v2981_v2  ;;  %v1565_v1 = vmul.f32 %v3089_v55, %v2996_v9 }
 0x522   : > { %v1366_v7 = vpack.c.bf16 %v1358_v28, %v1357_v47 }
 0x523   : > { %v1365_v24 = vpack.c.bf16 %v1356_v54, %v1355_v49 }
 0x525   : > { %1958 = vmatprep.mubr.bf16.mxu1 %v1365_v24 }
 0x526   : > { %1959 = vmatmul.mubr.bf16.gmra.mrb[24].mxu1 %v1366_v7 }
 0x5e0   : > { %v1948_v51 = vpop.f32.mrb[32].mxu0 }
 0x5e1   : > { %v1534_v36 = vmul.f32 %v1948_v51, %v3091_v61  ;;  %v1465_v4 = vpop.f32.mrb[33].mxu0 }
 0x5e2   : > { %v1532_v39 = vmul.f32 %v3091_v61, %v1465_v4  ;;  %v1949_v40 = vpop.f32.mrb[34].mxu0 }
 0x5e3   : > { %v1568_v31 = vadd.f32 %v1552_v26, %v1534_v36  ;;  %v1535_v41 = vmul.f32 %v1949_v40, %v3091_v61  ;;  %v1468_v42 = vpop.f32.mrb[35].mxu0 }
 0x5e4   : > { %v1566_v29 = vadd.f32 %v1550_v32, %v1532_v39  ;;  %v1533_v43 = vmul.f32 %v3091_v61, %v1468_v42 }
 0x5e5   : > { %1584 = vst.msk [vmem:[%s2786_s7 + $0x10] sm:$0xff] %vm818_vm1, %v1568_v31  ;;  %v1569_v63 = vadd.f32 %v1553_v38, %v1535_v41 }
 0x5e6   : > { %1582 = vst.msk [vmem:[%s2786_s7] sm:$0xff] %vm818_vm1, %v1566_v29  ;;  %v1567_v5 = vadd.f32 %v1551_v27, %v1533_v43 }
 0x5e7   : > { %1585 = vst.msk [vmem:[%s2786_s7 + $0x18] sm:$0xff] %vm818_vm1, %v1569_v63 }
 0x5e8   : > { %1583 = vst.msk [vmem:[%s2786_s7 + $0x8] sm:$0xff] %vm818_vm1, %v1567_v5 }
 0x5e9   : > { %v1952_v33 = vpop.f32.mrb[16].mxu1 }
 0x5ea   : > { %v1538_v12 = vmul.f32 %v1952_v33, %v3091_v61  ;;  %v1481_v35 = vpop.f32.mrb[17].mxu1 }
 0x5eb   : > { %v1536_v6 = vmul.f32 %v3091_v61, %v1481_v35  ;;  %v1953_v44 = vpop.f32.mrb[18].mxu1 }
 0x5ec   : > { %v1572_v57 = vadd.f32 %v1556_v30, %v1538_v12  ;;  %v1539_v14 = vmul.f32 %v1953_v44, %v3091_v61  ;;  %v1484_v15 = vpop.f32.mrb[19].mxu1 }
 0x5ed   : > { %v1570_v60 = vadd.f32 %v1554_v11, %v1536_v6  ;;  %v1537_v34 = vmul.f32 %v3091_v61, %v1484_v15 }
 0x5ee   : > { %1588 = vst.msk [vmem:[%s2786_s7 + $0x30] sm:$0xff] %vm818_vm1, %v1572_v57  ;;  %v1573_v16 = vadd.f32 %v1557_v13, %v1539_v14 }
 0x5ef   : > { %1586 = vst.msk [vmem:[%s2786_s7 + $0x20] sm:$0xff] %vm818_vm1, %v1570_v60  ;;  %v1571_v17 = vadd.f32 %v1555_v45, %v1537_v34 }
 0x5f0   : > { %1589 = vst.msk [vmem:[%s2786_s7 + $0x38] sm:$0xff] %vm818_vm1, %v1573_v16 }
 0x5f1   : > { %1587 = vst.msk [vmem:[%s2786_s7 + $0x28] sm:$0xff] %vm818_vm1, %v1571_v17  ;;  %v1956_v52 = vpop.f32.mrb[20].mxu1 }
 0x5f2   : > { %v1542_v19 = vmul.f32 %v1956_v52, %v3091_v61  ;;  %v1497_v62 = vpop.f32.mrb[21].mxu1 }
 0x5f3   : > { %v1540_v21 = vmul.f32 %v3091_v61, %v1497_v62  ;;  %v1957_v22 = vpop.f32.mrb[22].mxu1 }
 0x5f4   : > { %v1576_v48 = vadd.f32 %v1560_v53, %v1542_v19  ;;  %v1543_v37 = vmul.f32 %v1957_v22, %v3091_v61  ;;  %v1500_v23 = vpop.f32.mrb[23].mxu1 }
 0x5f5   : > { %v1574_v58 = vadd.f32 %v1558_v18, %v1540_v21  ;;  %v1541_v25 = vmul.f32 %v3091_v61, %v1500_v23 }
 0x5f6   : > { %1592 = vst.msk [vmem:[%s2786_s7 + $0x50] sm:$0xff] %vm818_vm1, %v1576_v48  ;;  %v1577_v46 = vadd.f32 %v1561_v20, %v1543_v37 }
 0x5f7   : > { %1590 = vst.msk [vmem:[%s2786_s7 + $0x40] sm:$0xff] %vm818_vm1, %v1574_v58  ;;  %v1575_v0 = vadd.f32 %v1559_v59, %v1541_v25 }
 0x5f8   : > { %1593 = vst.msk [vmem:[%s2786_s7 + $0x58] sm:$0xff] %vm818_vm1, %v1577_v46 }
 0x5f9   : > { %1591 = vst.msk [vmem:[%s2786_s7 + $0x48] sm:$0xff] %vm818_vm1, %v1575_v0  ;;  %v1960_v10 = vpop.f32.mrb[24].mxu1 }
 0x5fa   : > { %v1546_v47 = vmul.f32 %v1960_v10, %v3091_v61  ;;  %v1513_v28 = vpop.f32.mrb[25].mxu1 }
 0x5fb   : > { %v1544_v49 = vmul.f32 %v3091_v61, %v1513_v28  ;;  %v1961_v54 = vpop.f32.mrb[26].mxu1 }
 0x5fc   : > { %v1580_v7 = vadd.f32 %v1564_v56, %v1546_v47  ;;  %v1547_v2 = vmul.f32 %v1961_v54, %v3091_v61  ;;  %v1516_v24 = vpop.f32.mrb[27].mxu1 }
 0x5fd   : > { %v1578_v26 = vadd.f32 %v1562_v50, %v1544_v49  ;;  %v1545_v32 = vmul.f32 %v3091_v61, %v1516_v24 }
 0x5fe   : > { %1596 = vst.msk [vmem:[%s2786_s7 + $0x70] sm:$0xff] %vm818_vm1, %v1580_v7  ;;  %v1581_v9 = vadd.f32 %v1565_v1, %v1547_v2 }
 0x5ff   : > { %1594 = vst.msk [vmem:[%s2786_s7 + $0x60] sm:$0xff] %vm818_vm1, %v1578_v26  ;;  %v1579_v3 = vadd.f32 %v1563_v8, %v1545_v32 }
 0x600   : > { %1597 = vst.msk [vmem:[%s2786_s7 + $0x78] sm:$0xff] %vm818_vm1, %v1581_v9 }
 0x601   : > { %1595 = vst.msk [vmem:[%s2786_s7 + $0x68] sm:$0xff] %vm818_vm1, %v1579_v3 }
 0x602   : > { %2344 = shalt.err (!%p2341_p6)
}
 0x603   : > { %s2345_s3 = scalar_lea.hbm %s3173_s6, 2048  ;;  %s2349_s17 = scalar_lea.hbm %s3295_s10, 8192 }
 0x604   : > { %p2346_p11 = scmp.ne.s32.totalorder %s3173_s6, %s2345_s3  ;;  %p2350_p10 = scmp.lt.u32.totalorder %s3173_s6, %s3295_s10 }
 0x605   : > { %p2351_p0 = scmp.lt.u32.totalorder %s2349_s17, %s2345_s3  ;;  %p2353_p3 = scmp.lt.u32.totalorder %s2345_s3, %s3173_s6 }
 0x606   : > { %p2347_p2 = pnand %p2346_p11, %p3296_p5 }
 0x607   : > { %p2352_p12 = por %p2351_p0, %p2350_p10 }
 0x608   : > { %p2348_p4 = pneg %p2347_p2 }
 0x609   : > { %p2354_p7 = por %p2353_p3, %p2352_p12 }
 0x60b   : > { %p2355_p13 = pnand %p2354_p7, %p2348_p4 }
 0x60d   : > { %2358 = shalt.err (!%p2355_p13)
}
 0x60e   : > { %s2478_s24 = smov 128   ;;  %s2479_s11 = smov 8  }
 0x60f   : > { %1996 = dma.vmem_to_hbm [thread:$0]  (%p3296_p5), %s3175_s5, 2048, %s3173_s6, %s3185_s12, %s2478_s24, %s2478_s24, %s2479_s11  }
 0x610 PF: > { %s3297_s9 = sld [smem:[#allocation19_spill]]  ;;  %s3298_s30 = sld [smem:[#allocation22_spill]] }
 0x611   : > { %p2028_p8 = scmp.ge.s32.totalorder %s2465_s28, 2 }
 0x616   : > { %s1629_s25 = sand.u32 1, %s3297_s9   ;;  %p3299_p9 = scmp.ne.s32.totalorder %s3298_s30, 0 }
 0x617   : > { %s1630_s8 = scalar_lea.sflag [#allocation5], %s1629_s25 }
 0x618   : > { %p2016_p1 = pnand %p2028_p8, %p3299_p9 }
 0x61a   : > { %2420 = dma.done.wait (!%p2016_p1), %s1630_s8, 2048  }
 0x61b   : > { %2422 = vsyncadd (!%p2016_p1), %s1630_s8, 4294965248  ;;  %s24_s28 = sadd.s32 1, %s2465_s28   ;;  %s3300_s5 = smov %s2711_s21 }
 0x61c   : > { %p21_p6 = scmp.ge.s32.totalorder %s24_s28, 6   ;;  %s3301_s18 = smov %s2429_s19 }
 0x61d   : > { %s3302_s19 = smov %s2433_s20  ;;  %s3303_s20 = smov %s2714_s0 }
 0x61e   : > { %s3304_s21 = smov %s2441_s22  ;;  %s3305_s22 = smov %s2445_s23 }
 0x61f   : > { %s3306_s23 = smov %s3300_s5  ;;  %s3307_s24 = smov %s2457_s26 }
 0x620   : > { %s3308_s25 = smov %s2461_s27  ;;  %s3309_s26 = smov %s3312_s13 }
 0x621   : > { %s3310_s27 = smov %s3316_s29  ;;  %23 = sbr.rel (!%p21_p6) target bundleno = 17 (0x11), region = 107 }
 0x628   :  { %1635 = vsyncpa [#allocation4], 1 }
 0x629   :  { %1637 = vsyncpa [#allocation4 + $0x1], 1 }
 0x62a   :  { %1638 = vsyncpa [#allocation9], 1 }
 0x62b   :  { %1639 = vsyncpa [#allocation12], 1 }
 0x62c   :  { %1640 = vsyncpa [#allocation5], 1 }
 0x62d   :  { %1642 = vsyncpa [#allocation5 + $0x1], 1 }
 0x62e   :  { %1643 = vsyncpa [#allocation6], 1 }
 0x62f   :  { %1645 = vsyncpa [#allocation6 + $0x1], 1 }

</bundles_post_ra>
